<compile_context>
chip_gen: v7x
topology: tpu7x:2x2x1
jax: 0.10.0
libtpu: 0.0.40
codegen_flags: <defaults>
</compile_context>

<pallas_src>
import functools

import jax
import jax.numpy as jnp
from jax import lax
from jax.experimental import pallas as pl
from jax.experimental.pallas import tpu as pltpu

KW = 4          # kernel size
PADW = 2        # int(ceil((4 - 1) / 2))
LRELU_SLOPE = 0.2
IN_EPS = 1e-5   # nn.InstanceNorm2d default eps

TM_MAX, TN_MAX, TK_MAX = 256, 256, 512


def _round_up(x, m):
    return ((x + m - 1) // m) * m


# ----------------------------------------------------------------------------
# Pallas kernels
# ----------------------------------------------------------------------------
def _conv_mm_kernel(p_ref, w_ref, b_ref, o_ref, acc_ref, *, leaky):
    """Tiled matmul with K-reduction accumulator.  p:(tm,tk) bf16, w:(tk,tn) bf16,
    b:(1,tn) f32, o:(tm,tn) f32, acc:(tm,tn) f32 scratch."""
    k = pl.program_id(2)

    @pl.when(k == 0)
    def _():
        acc_ref[...] = jnp.zeros_like(acc_ref)

    acc_ref[...] += jnp.dot(p_ref[...], w_ref[...],
                            preferred_element_type=jnp.float32)

    @pl.when(k == pl.num_programs(2) - 1)
    def _():
        out = acc_ref[...] + b_ref[...]
        if leaky:
            out = jnp.where(out >= 0, out, LRELU_SLOPE * out)
        o_ref[...] = out.astype(o_ref.dtype)


def conv_matmul(patches, wmat, bias, leaky, tm, tn, tk):
    """patches:(Mp,Kp) bf16, wmat:(Kp,Cop) bf16, bias:(1,Cop) f32 -> (Mp,Cop) f32."""
    Mp, Kp = patches.shape
    _, Cop = wmat.shape
    grid = (Mp // tm, Cop // tn, Kp // tk)
    return pl.pallas_call(
        functools.partial(_conv_mm_kernel, leaky=leaky),
        out_shape=jax.ShapeDtypeStruct((Mp, Cop), jnp.float32),
        grid_spec=pltpu.PrefetchScalarGridSpec(
            num_scalar_prefetch=0,
            grid=grid,
            in_specs=[
                pl.BlockSpec((tm, tk), lambda i, j, k: (i, k)),
                pl.BlockSpec((tk, tn), lambda i, j, k: (k, j)),
                pl.BlockSpec((1, tn), lambda i, j, k: (0, j)),
            ],
            out_specs=pl.BlockSpec((tm, tn), lambda i, j, k: (i, j)),
            scratch_shapes=[pltpu.VMEM((tm, tn), jnp.float32)],
        ),
        compiler_params=pltpu.CompilerParams(
            dimension_semantics=("parallel", "parallel", "arbitrary")),
    )(patches, wmat, bias)


def _in_stats_kernel(x_ref, sum_ref, sq_ref):
    """Accumulate per-(n, c) sum and sum-of-squares over HW tiles."""
    h = pl.program_id(1)

    @pl.when(h == 0)
    def _():
        sum_ref[...] = jnp.zeros_like(sum_ref)
        sq_ref[...] = jnp.zeros_like(sq_ref)

    x = x_ref[...]                                   # (1, thw, C)
    sum_ref[...] += jnp.sum(x, axis=1, keepdims=True)
    sq_ref[...] += jnp.sum(x * x, axis=1, keepdims=True)


def _in_apply_kernel(x_ref, sum_ref, sq_ref, o_ref, *, hw_real):
    """InstanceNorm (biased var, no affine) + LeakyReLU(0.2) on one HW tile."""
    x = x_ref[...]
    mean = sum_ref[...] * (1.0 / hw_real)
    var = jnp.maximum(sq_ref[...] * (1.0 / hw_real) - mean * mean, 0.0)
    y = (x - mean) * lax.rsqrt(var + IN_EPS)
    o_ref[...] = jnp.where(y >= 0, y, LRELU_SLOPE * y)


def instance_norm_lrelu(x):
    """x: (N, HW, C) f32 -> InstanceNorm2d + LeakyReLU(0.2), tiled over HW."""
    N, HW, C = x.shape
    thw = min(512, _round_up(HW, 8))
    HWp = _round_up(HW, thw)
    xp = jnp.pad(x, ((0, 0), (0, HWp - HW), (0, 0)))   # zero pad -> sums unaffected
    n_t = HWp // thw

    sums, sqs = pl.pallas_call(
        _in_stats_kernel,
        out_shape=(jax.ShapeDtypeStruct((N, 1, C), jnp.float32),
                   jax.ShapeDtypeStruct((N, 1, C), jnp.float32)),
        grid=(N, n_t),
        in_specs=[pl.BlockSpec((1, thw, C), lambda n, h: (n, h, 0))],
        out_specs=(pl.BlockSpec((1, 1, C), lambda n, h: (n, 0, 0)),
                   pl.BlockSpec((1, 1, C), lambda n, h: (n, 0, 0))),
        compiler_params=pltpu.CompilerParams(
            dimension_semantics=("parallel", "arbitrary")),
    )(xp)

    y = pl.pallas_call(
        functools.partial(_in_apply_kernel, hw_real=float(HW)),
        out_shape=jax.ShapeDtypeStruct((N, HWp, C), jnp.float32),
        grid=(N, n_t),
        in_specs=[pl.BlockSpec((1, thw, C), lambda n, h: (n, h, 0)),
                  pl.BlockSpec((1, 1, C), lambda n, h: (n, 0, 0)),
                  pl.BlockSpec((1, 1, C), lambda n, h: (n, 0, 0))],
        out_specs=pl.BlockSpec((1, thw, C), lambda n, h: (n, h, 0)),
        compiler_params=pltpu.CompilerParams(
            dimension_semantics=("parallel", "parallel")),
    )(xp, sums, sqs)
    return y[:, :HW, :]


# ----------------------------------------------------------------------------
# Plain-JAX glue (channels-last)
# ----------------------------------------------------------------------------
def im2col_nhwc(x, kw, stride, pad):
    """x: (N, H, W, C) -> (N, Ho*Wo, kw*kw*C) with (kh, kw, c) flattening order."""
    N, H, W, C = x.shape
    xp = jnp.pad(x, ((0, 0), (pad, pad), (pad, pad), (0, 0)))
    Hp, Wp = H + 2 * pad, W + 2 * pad
    Ho = (Hp - kw) // stride + 1
    Wo = (Wp - kw) // stride + 1
    cols = []
    for i in range(kw):
        for j in range(kw):
            cols.append(xp[:, i:i + stride * Ho:stride, j:j + stride * Wo:stride, :])
    cols = jnp.stack(cols, axis=3)                     # (N, Ho, Wo, kw*kw, C)
    return cols.reshape(N, Ho * Wo, kw * kw * C), Ho, Wo


def conv_layer_nhwc(x, w, b, stride, use_norm, use_leaky):
    """x: (N, H, W, Cin) f32, w: (Cout, Cin, kh, kw), b: (Cout,) -> (N, Ho, Wo, Cout)."""
    N, H, W, Cin = x.shape
    Co = w.shape[0]
    cols, Ho, Wo = im2col_nhwc(x, KW, stride, PADW)    # (N, Ho*Wo, K)
    M = N * Ho * Wo
    K = KW * KW * Cin

    # Tile sizes (capped for VMEM budget) and padding to tile multiples.
    tm = min(TM_MAX, _round_up(M, 8))
    tn = min(TN_MAX, _round_up(Co, 128))
    tk = min(TK_MAX, _round_up(K, 128))
    Mp = _round_up(M, tm)
    Cop = _round_up(Co, tn)
    Kp = _round_up(K, tk)

    patches = cols.reshape(M, K)
    patches = jnp.pad(patches, ((0, Mp - M), (0, Kp - K))).astype(jnp.bfloat16)

    # (Cout, Cin, kh, kw) -> (kh, kw, Cin, Cout) -> (K, Cout); matches patch order.
    wmat = jnp.transpose(w, (2, 3, 1, 0)).reshape(K, Co)
    wmat = jnp.pad(wmat, ((0, Kp - K), (0, Cop - Co))).astype(jnp.bfloat16)
    bias = jnp.pad(b, (0, Cop - Co)).reshape(1, Cop).astype(jnp.float32)

    fuse_leaky = use_leaky and not use_norm
    out = conv_matmul(patches, wmat, bias, fuse_leaky, tm, tn, tk)   # (Mp, Cop) f32
    out = out[:M, :Co].reshape(N, Ho * Wo, Co)
    if use_norm:
        out = instance_norm_lrelu(out)                 # norm then LeakyReLU
    return out.reshape(N, Ho, Wo, Co)


def make_params(key, input_nc, ndf, n_layers):
    """Deterministic (PyTorch-default-style uniform) conv params."""
    specs = []
    nf = ndf
    specs.append((input_nc, ndf))
    for _ in range(1, n_layers):
        nf_prev, nf = nf, min(nf * 2, 512)
        specs.append((nf_prev, nf))
    nf_prev, nf = nf, min(nf * 2, 512)
    specs.append((nf_prev, nf))
    specs.append((nf, 1))
    params = []
    for (cin, cout) in specs:
        key, kw_, kb_ = jax.random.split(key, 3)
        bound = 1.0 / jnp.sqrt(cin * KW * KW)
        w = jax.random.uniform(kw_, (cout, cin, KW, KW), jnp.float32, -bound, bound)
        b = jax.random.uniform(kb_, (cout,), jnp.float32, -bound, bound)
        params.append((w, b))
    return params


def discriminator_forward(x, params, n_layers=3):
    """x: (N, C, H, W); getIntermFeat=False, use_sigmoid=False path."""
    cfgs = [(2, False, True)]
    cfgs += [(2, True, True)] * (n_layers - 1)
    cfgs += [(1, True, True)]
    cfgs += [(1, False, False)]
    out = jnp.transpose(x, (0, 2, 3, 1))               # NCHW -> NHWC once
    for (w, b), (stride, use_norm, use_leaky) in zip(params, cfgs):
        out = conv_layer_nhwc(out, w, b, stride, use_norm, use_leaky)
    return jnp.transpose(out, (0, 3, 1, 2))            # NHWC -> NCHW at the boundary


# ----------------------------------------------------------------------------
# Pure-JAX reference (for correctness check)
# ----------------------------------------------------------------------------
def reference_forward(x, params, n_layers=3, quantize=False):
    """quantize=True mirrors the kernel's bf16-operand / f32-accumulate contract."""
    cfgs = [(2, False, True)]
    cfgs += [(2, True, True)] * (n_layers - 1)
    cfgs += [(1, True, True)]
    cfgs += [(1, False, False)]
    out = x
    for (w, b), (stride, use_norm, use_leaky) in zip(params, cfgs):
        lhs, rhs = out, w
        if quantize:
            lhs = lhs.astype(jnp.bfloat16).astype(jnp.float32)
            rhs = rhs.astype(jnp.bfloat16).astype(jnp.float32)
        out = lax.conv_general_dilated(
            lhs, rhs, window_strides=(stride, stride),
            padding=[(PADW, PADW), (PADW, PADW)],
            dimension_numbers=("NCHW", "OIHW", "NCHW"),
            precision=lax.Precision.HIGHEST,
        ) + b[None, :, None, None]
        if use_norm:
            mean = jnp.mean(out, axis=(2, 3), keepdims=True)
            var = jnp.mean((out - mean) ** 2, axis=(2, 3), keepdims=True)
            out = (out - mean) * lax.rsqrt(var + IN_EPS)
        if use_leaky:
            out = jnp.where(out >= 0, out, LRELU_SLOPE * out)
    return out


if __name__ == "__main__":
    key = jax.random.PRNGKey(0)
    k_in, k_p = jax.random.split(key)

    batch, input_nc, spatial = 2, 4, 16
    ndf, n_layers = 8, 3

    x = jax.random.normal(k_in, (batch, input_nc, spatial, spatial), jnp.float32)
    params = make_params(k_p, input_nc, ndf, n_layers)

    fwd = jax.jit(functools.partial(discriminator_forward, n_layers=n_layers))
    out = jax.block_until_ready(fwd(x, params))

    # Tight check vs a reference using the same bf16-operand quantization,
    # loose check vs the pure-f32 PyTorch-equivalent reference.
    ref_q = jax.block_until_ready(
        reference_forward(x, params, n_layers=n_layers, quantize=True))
    ref_f = jax.block_until_ready(
        reference_forward(x, params, n_layers=n_layers, quantize=False))

    assert out.shape == ref_q.shape, (out.shape, ref_q.shape)
    err_q = float(jnp.max(jnp.abs(out - ref_q)))
    err_f = float(jnp.max(jnp.abs(out - ref_f)))
    assert jnp.allclose(out, ref_q, atol=2e-3, rtol=2e-3), err_q
    assert jnp.allclose(out, ref_f, atol=5e-2, rtol=5e-2), err_f

    print("KERNEL_OK")
</pallas_src>

<mosaic_0001>
module attributes {stable_mosaic.version = 11 : i64} {
  func.func @_conv_mm_kernel(%arg0: i32, %arg1: i32, %arg2: i32, %arg3: memref<168x128xbf16, #tpu.memory_space<vmem>>, %arg4: memref<128x128xbf16, #tpu.memory_space<vmem>>, %arg5: memref<1x128xf32, #tpu.memory_space<vmem>>, %arg6: memref<168x128xf32, #tpu.memory_space<vmem>>, %arg7: memref<168x128xf32, #tpu.memory_space<vmem>>) attributes {dimension_semantics = [#tpu.dimension_semantics<parallel>, #tpu.dimension_semantics<parallel>, #tpu.dimension_semantics<arbitrary>], iteration_bounds = array<i64: 1, 1, 1>, scalar_prefetch = 0 : i64, scratch_operands = 1 : i64, tpu.core_type = #tpu.core_type<tc>, window_params = [{transform_indices = @transform_0, window_bounds = array<i64: 168, 128>}, {transform_indices = @transform_1, window_bounds = array<i64: 128, 128>}, {transform_indices = @transform_2, window_bounds = array<i64: 1, 128>}, {transform_indices = @transform_3, window_bounds = array<i64: 168, 128>}]} {
    %c0_i32 = arith.constant 0 : i32
    %0 = arith.cmpi eq, %arg2, %c0_i32 : i32
    %1 = arith.extui %0 : i1 to i32
    %c0_i32_0 = arith.constant 0 : i32
    %2 = arith.cmpi ne, %1, %c0_i32_0 : i32
    scf.if %2 {
      %cst_10 = arith.constant 0.000000e+00 : f32
      %12 = vector.broadcast %cst_10 : f32 to vector<168x128xf32>
      %c0_11 = arith.constant 0 : index
      %c0_12 = arith.constant 0 : index
      %13 = vector.load %arg7[%c0_11, %c0_12] : memref<168x128xf32, #tpu.memory_space<vmem>>, vector<168x128xf32>
      tpu.vector_store %arg7[%c0_11, %c0_12], %12 {strides = array<i32>} : memref<168x128xf32, #tpu.memory_space<vmem>>, vector<168x128xf32>,
    } else {
    }
    %c0 = arith.constant 0 : index
    %c0_1 = arith.constant 0 : index
    %3 = vector.load %arg7[%c0, %c0_1] : memref<168x128xf32, #tpu.memory_space<vmem>>, vector<168x128xf32>
    %c0_2 = arith.constant 0 : index
    %c0_3 = arith.constant 0 : index
    %4 = vector.load %arg3[%c0_2, %c0_3] : memref<168x128xbf16, #tpu.memory_space<vmem>>, vector<168x128xbf16>
    %c0_4 = arith.constant 0 : index
    %c0_5 = arith.constant 0 : index
    %5 = vector.load %arg4[%c0_4, %c0_5] : memref<128x128xbf16, #tpu.memory_space<vmem>>, vector<128x128xbf16>
    %cst = arith.constant dense<0.000000e+00> : vector<168x128xf32>
    %6 = tpu.matmul %4, %5, %cst {dimension_numbers = #tpu.dot_dimension_numbers<[1], [0], [0], [1], [0, 0, 1, 1], [], []>} : vector<168x128xbf16>, vector<128x128xbf16>, vector<168x128xf32> -> vector<168x128xf32>
    %7 = arith.addf %3, %6 : vector<168x128xf32>
    %c0_6 = arith.constant 0 : index
    %c0_7 = arith.constant 0 : index
    %8 = vector.load %arg7[%c0_6, %c0_7] : memref<168x128xf32, #tpu.memory_space<vmem>>, vector<168x128xf32>
    tpu.vector_store %arg7[%c0_6, %c0_7], %7 {strides = array<i32>} : memref<168x128xf32, #tpu.memory_space<vmem>>, vector<168x128xf32>,
    %c0_i32_8 = arith.constant 0 : i32
    %9 = arith.cmpi eq, %arg2, %c0_i32_8 : i32
    %10 = arith.extui %9 : i1 to i32
    %c0_i32_9 = arith.constant 0 : i32
    %11 = arith.cmpi ne, %10, %c0_i32_9 : i32
    scf.if %11 {
      %c0_10 = arith.constant 0 : index
      %c0_11 = arith.constant 0 : index
      %12 = vector.load %arg7[%c0_10, %c0_11] : memref<168x128xf32, #tpu.memory_space<vmem>>, vector<168x128xf32>
      %c0_12 = arith.constant 0 : index
      %c0_13 = arith.constant 0 : index
      %13 = vector.load %arg5[%c0_12, %c0_13] : memref<1x128xf32, #tpu.memory_space<vmem>>, vector<1x128xf32>
      %14 = vector.broadcast %13 : vector<1x128xf32> to vector<168x128xf32>
      %15 = arith.addf %12, %14 : vector<168x128xf32>
      %cst_14 = arith.constant 0.000000e+00 : f32
      %16 = vector.broadcast %cst_14 : f32 to vector<168x128xf32>
      %17 = arith.cmpf oge, %15, %16 : vector<168x128xf32>
      %cst_15 = arith.constant 2.000000e-01 : f32
      %18 = vector.broadcast %cst_15 : f32 to vector<168x128xf32>
      %19 = arith.mulf %18, %15 : vector<168x128xf32>
      %20 = arith.select %17, %15, %19 : vector<168x128xi1>, vector<168x128xf32>
      %c0_16 = arith.constant 0 : index
      %c0_17 = arith.constant 0 : index
      %21 = vector.load %arg6[%c0_16, %c0_17] : memref<168x128xf32, #tpu.memory_space<vmem>>, vector<168x128xf32>
      tpu.vector_store %arg6[%c0_16, %c0_17], %20 {strides = array<i32>} : memref<168x128xf32, #tpu.memory_space<vmem>>, vector<168x128xf32>,
    } else {
    }
    return
  }
  func.func @transform_0(%arg0: i32, %arg1: i32, %arg2: i32) -> (i32, i32) {
    %c0_i32 = arith.constant 0 : i32
    return %arg0, %arg2 : i32, i32
  }
  func.func @transform_1(%arg0: i32, %arg1: i32, %arg2: i32) -> (i32, i32) {
    %c0_i32 = arith.constant 0 : i32
    return %arg2, %arg1 : i32, i32
  }
  func.func @transform_2(%arg0: i32, %arg1: i32, %arg2: i32) -> (i32, i32) {
    %c0_i32 = arith.constant 0 : i32
    %c0_i32_0 = arith.constant 0 : i32
    return %c0_i32, %arg1 : i32, i32
  }
  func.func @transform_3(%arg0: i32, %arg1: i32, %arg2: i32) -> (i32, i32) {
    %c0_i32 = arith.constant 0 : i32
    return %arg0, %arg1 : i32, i32
  }
}

module attributes {stable_mosaic.version = 11 : i64} {
  func.func @_in_stats_kernel(%arg0: i32, %arg1: i32, %arg2: memref<1x32x16xf32, #tpu.memory_space<vmem>>, %arg3: memref<1x1x16xf32, #tpu.memory_space<vmem>>, %arg4: memref<1x1x16xf32, #tpu.memory_space<vmem>>) attributes {dimension_semantics = [#tpu.dimension_semantics<parallel>, #tpu.dimension_semantics<arbitrary>], iteration_bounds = array<i64: 2, 1>, scalar_prefetch = 0 : i64, scratch_operands = 0 : i64, tpu.core_type = #tpu.core_type<tc>, window_params = [{transform_indices = @transform_0, window_bounds = array<i64: 1, 32, 16>}, {transform_indices = @transform_1, window_bounds = array<i64: 1, 1, 16>}, {transform_indices = @transform_2, window_bounds = array<i64: 1, 1, 16>}]} {
    %c0_i32 = arith.constant 0 : i32
    %0 = arith.cmpi eq, %arg1, %c0_i32 : i32
    %1 = arith.extui %0 : i1 to i32
    %c0_i32_0 = arith.constant 0 : i32
    %2 = arith.cmpi ne, %1, %c0_i32_0 : i32
    scf.if %2 {
      %cst_16 = arith.constant 0.000000e+00 : f32
      %15 = vector.broadcast %cst_16 : f32 to vector<1x1x16xf32>
      %c0_17 = arith.constant 0 : index
      %c0_18 = arith.constant 0 : index
      %c0_19 = arith.constant 0 : index
      %16 = vector.load %arg3[%c0_17, %c0_18, %c0_19] : memref<1x1x16xf32, #tpu.memory_space<vmem>>, vector<1x1x16xf32>
      tpu.vector_store %arg3[%c0_17, %c0_18, %c0_19], %15 {strides = array<i32>} : memref<1x1x16xf32, #tpu.memory_space<vmem>>, vector<1x1x16xf32>,
      %cst_20 = arith.constant 0.000000e+00 : f32
      %17 = vector.broadcast %cst_20 : f32 to vector<1x1x16xf32>
      %c0_21 = arith.constant 0 : index
      %c0_22 = arith.constant 0 : index
      %c0_23 = arith.constant 0 : index
      %18 = vector.load %arg4[%c0_21, %c0_22, %c0_23] : memref<1x1x16xf32, #tpu.memory_space<vmem>>, vector<1x1x16xf32>
      tpu.vector_store %arg4[%c0_21, %c0_22, %c0_23], %17 {strides = array<i32>} : memref<1x1x16xf32, #tpu.memory_space<vmem>>, vector<1x1x16xf32>,
    } else {
    }
    %c0 = arith.constant 0 : index
    %c0_1 = arith.constant 0 : index
    %c0_2 = arith.constant 0 : index
    %3 = vector.load %arg2[%c0, %c0_1, %c0_2] : memref<1x32x16xf32, #tpu.memory_space<vmem>>, vector<1x32x16xf32>
    %c0_3 = arith.constant 0 : index
    %c0_4 = arith.constant 0 : index
    %c0_5 = arith.constant 0 : index
    %4 = vector.load %arg3[%c0_3, %c0_4, %c0_5] : memref<1x1x16xf32, #tpu.memory_space<vmem>>, vector<1x1x16xf32>
    %cst = arith.constant dense<0.000000e+00> : vector<1x16xf32>
    %5 = vector.multi_reduction <add>, %3, %cst [1] : vector<1x32x16xf32> to vector<1x16xf32>
    %6 = vector.shape_cast %5 : vector<1x16xf32> to vector<1x1x16xf32>
    %7 = arith.addf %4, %6 : vector<1x1x16xf32>
    %c0_6 = arith.constant 0 : index
    %c0_7 = arith.constant 0 : index
    %c0_8 = arith.constant 0 : index
    %8 = vector.load %arg3[%c0_6, %c0_7, %c0_8] : memref<1x1x16xf32, #tpu.memory_space<vmem>>, vector<1x1x16xf32>
    tpu.vector_store %arg3[%c0_6, %c0_7, %c0_8], %7 {strides = array<i32>} : memref<1x1x16xf32, #tpu.memory_space<vmem>>, vector<1x1x16xf32>,
    %c0_9 = arith.constant 0 : index
    %c0_10 = arith.constant 0 : index
    %c0_11 = arith.constant 0 : index
    %9 = vector.load %arg4[%c0_9, %c0_10, %c0_11] : memref<1x1x16xf32, #tpu.memory_space<vmem>>, vector<1x1x16xf32>
    %10 = arith.mulf %3, %3 : vector<1x32x16xf32>
    %cst_12 = arith.constant dense<0.000000e+00> : vector<1x16xf32>
    %11 = vector.multi_reduction <add>, %10, %cst_12 [1] : vector<1x32x16xf32> to vector<1x16xf32>
    %12 = vector.shape_cast %11 : vector<1x16xf32> to vector<1x1x16xf32>
    %13 = arith.addf %9, %12 : vector<1x1x16xf32>
    %c0_13 = arith.constant 0 : index
    %c0_14 = arith.constant 0 : index
    %c0_15 = arith.constant 0 : index
    %14 = vector.load %arg4[%c0_13, %c0_14, %c0_15] : memref<1x1x16xf32, #tpu.memory_space<vmem>>, vector<1x1x16xf32>
    tpu.vector_store %arg4[%c0_13, %c0_14, %c0_15], %13 {strides = array<i32>} : memref<1x1x16xf32, #tpu.memory_space<vmem>>, vector<1x1x16xf32>,
    return
  }
  func.func @transform_0(%arg0: i32, %arg1: i32) -> (i32, i32, i32) {
    %c0_i32 = arith.constant 0 : i32
    %c0_i32_0 = arith.constant 0 : i32
    return %arg0, %arg1, %c0_i32 : i32, i32, i32
  }
  func.func @transform_1(%arg0: i32, %arg1: i32) -> (i32, i32, i32) {
    %c0_i32 = arith.constant 0 : i32
    %c0_i32_0 = arith.constant 0 : i32
    %c0_i32_1 = arith.constant 0 : i32
    return %arg0, %c0_i32, %c0_i32_0 : i32, i32, i32
  }
  func.func @transform_2(%arg0: i32, %arg1: i32) -> (i32, i32, i32) {
    %c0_i32 = arith.constant 0 : i32
    %c0_i32_0 = arith.constant 0 : i32
    %c0_i32_1 = arith.constant 0 : i32
    return %arg0, %c0_i32, %c0_i32_0 : i32, i32, i32
  }
}

module attributes {stable_mosaic.version = 11 : i64} {
  func.func @_conv_mm_kernel(%arg0: i32, %arg1: i32, %arg2: i32, %arg3: memref<56x128xbf16, #tpu.memory_space<vmem>>, %arg4: memref<128x128xbf16, #tpu.memory_space<vmem>>, %arg5: memref<1x128xf32, #tpu.memory_space<vmem>>, %arg6: memref<56x128xf32, #tpu.memory_space<vmem>>, %arg7: memref<56x128xf32, #tpu.memory_space<vmem>>) attributes {dimension_semantics = [#tpu.dimension_semantics<parallel>, #tpu.dimension_semantics<parallel>, #tpu.dimension_semantics<arbitrary>], iteration_bounds = array<i64: 1, 1, 1>, scalar_prefetch = 0 : i64, scratch_operands = 1 : i64, tpu.core_type = #tpu.core_type<tc>, window_params = [{transform_indices = @transform_0, window_bounds = array<i64: 56, 128>}, {transform_indices = @transform_1, window_bounds = array<i64: 128, 128>}, {transform_indices = @transform_2, window_bounds = array<i64: 1, 128>}, {transform_indices = @transform_3, window_bounds = array<i64: 56, 128>}]} {
    %c0_i32 = arith.constant 0 : i32
    %0 = arith.cmpi eq, %arg2, %c0_i32 : i32
    %1 = arith.extui %0 : i1 to i32
    %c0_i32_0 = arith.constant 0 : i32
    %2 = arith.cmpi ne, %1, %c0_i32_0 : i32
    scf.if %2 {
      %cst_10 = arith.constant 0.000000e+00 : f32
      %12 = vector.broadcast %cst_10 : f32 to vector<56x128xf32>
      %c0_11 = arith.constant 0 : index
      %c0_12 = arith.constant 0 : index
      %13 = vector.load %arg7[%c0_11, %c0_12] : memref<56x128xf32, #tpu.memory_space<vmem>>, vector<56x128xf32>
      tpu.vector_store %arg7[%c0_11, %c0_12], %12 {strides = array<i32>} : memref<56x128xf32, #tpu.memory_space<vmem>>, vector<56x128xf32>,
    } else {
    }
    %c0 = arith.constant 0 : index
    %c0_1 = arith.constant 0 : index
    %3 = vector.load %arg7[%c0, %c0_1] : memref<56x128xf32, #tpu.memory_space<vmem>>, vector<56x128xf32>
    %c0_2 = arith.constant 0 : index
    %c0_3 = arith.constant 0 : index
    %4 = vector.load %arg3[%c0_2, %c0_3] : memref<56x128xbf16, #tpu.memory_space<vmem>>, vector<56x128xbf16>
    %c0_4 = arith.constant 0 : index
    %c0_5 = arith.constant 0 : index
    %5 = vector.load %arg4[%c0_4, %c0_5] : memref<128x128xbf16, #tpu.memory_space<vmem>>, vector<128x128xbf16>
    %cst = arith.constant dense<0.000000e+00> : vector<56x128xf32>
    %6 = tpu.matmul %4, %5, %cst {dimension_numbers = #tpu.dot_dimension_numbers<[1], [0], [0], [1], [0, 0, 1, 1], [], []>} : vector<56x128xbf16>, vector<128x128xbf16>, vector<56x128xf32> -> vector<56x128xf32>
    %7 = arith.addf %3, %6 : vector<56x128xf32>
    %c0_6 = arith.constant 0 : index
    %c0_7 = arith.constant 0 : index
    %8 = vector.load %arg7[%c0_6, %c0_7] : memref<56x128xf32, #tpu.memory_space<vmem>>, vector<56x128xf32>
    tpu.vector_store %arg7[%c0_6, %c0_7], %7 {strides = array<i32>} : memref<56x128xf32, #tpu.memory_space<vmem>>, vector<56x128xf32>,
    %c0_i32_8 = arith.constant 0 : i32
    %9 = arith.cmpi eq, %arg2, %c0_i32_8 : i32
    %10 = arith.extui %9 : i1 to i32
    %c0_i32_9 = arith.constant 0 : i32
    %11 = arith.cmpi ne, %10, %c0_i32_9 : i32
    scf.if %11 {
      %c0_10 = arith.constant 0 : index
      %c0_11 = arith.constant 0 : index
      %12 = vector.load %arg7[%c0_10, %c0_11] : memref<56x128xf32, #tpu.memory_space<vmem>>, vector<56x128xf32>
      %c0_12 = arith.constant 0 : index
      %c0_13 = arith.constant 0 : index
      %13 = vector.load %arg5[%c0_12, %c0_13] : memref<1x128xf32, #tpu.memory_space<vmem>>, vector<1x128xf32>
      %14 = vector.broadcast %13 : vector<1x128xf32> to vector<56x128xf32>
      %15 = arith.addf %12, %14 : vector<56x128xf32>
      %c0_14 = arith.constant 0 : index
      %c0_15 = arith.constant 0 : index
      %16 = vector.load %arg6[%c0_14, %c0_15] : memref<56x128xf32, #tpu.memory_space<vmem>>, vector<56x128xf32>
      tpu.vector_store %arg6[%c0_14, %c0_15], %15 {strides = array<i32>} : memref<56x128xf32, #tpu.memory_space<vmem>>, vector<56x128xf32>,
    } else {
    }
    return
  }
  func.func @transform_0(%arg0: i32, %arg1: i32, %arg2: i32) -> (i32, i32) {
    %c0_i32 = arith.constant 0 : i32
    return %arg0, %arg2 : i32, i32
  }
  func.func @transform_1(%arg0: i32, %arg1: i32, %arg2: i32) -> (i32, i32) {
    %c0_i32 = arith.constant 0 : i32
    return %arg2, %arg1 : i32, i32
  }
  func.func @transform_2(%arg0: i32, %arg1: i32, %arg2: i32) -> (i32, i32) {
    %c0_i32 = arith.constant 0 : i32
    %c0_i32_0 = arith.constant 0 : i32
    return %c0_i32, %arg1 : i32, i32
  }
  func.func @transform_3(%arg0: i32, %arg1: i32, %arg2: i32) -> (i32, i32) {
    %c0_i32 = arith.constant 0 : i32
    return %arg0, %arg1 : i32, i32
  }
}

module attributes {stable_mosaic.version = 11 : i64} {
  func.func @_in_apply_kernel(%arg0: i32, %arg1: i32, %arg2: memref<1x32x16xf32, #tpu.memory_space<vmem>>, %arg3: memref<1x1x16xf32, #tpu.memory_space<vmem>>, %arg4: memref<1x1x16xf32, #tpu.memory_space<vmem>>, %arg5: memref<1x32x16xf32, #tpu.memory_space<vmem>>) attributes {dimension_semantics = [#tpu.dimension_semantics<parallel>, #tpu.dimension_semantics<parallel>], iteration_bounds = array<i64: 2, 1>, scalar_prefetch = 0 : i64, scratch_operands = 0 : i64, tpu.core_type = #tpu.core_type<tc>, window_params = [{transform_indices = @transform_0, window_bounds = array<i64: 1, 32, 16>}, {transform_indices = @transform_1, window_bounds = array<i64: 1, 1, 16>}, {transform_indices = @transform_2, window_bounds = array<i64: 1, 1, 16>}, {transform_indices = @transform_3, window_bounds = array<i64: 1, 32, 16>}]} {
    %c0 = arith.constant 0 : index
    %c0_0 = arith.constant 0 : index
    %c0_1 = arith.constant 0 : index
    %0 = vector.load %arg2[%c0, %c0_0, %c0_1] : memref<1x32x16xf32, #tpu.memory_space<vmem>>, vector<1x32x16xf32>
    %c0_2 = arith.constant 0 : index
    %c0_3 = arith.constant 0 : index
    %c0_4 = arith.constant 0 : index
    %1 = vector.load %arg3[%c0_2, %c0_3, %c0_4] : memref<1x1x16xf32, #tpu.memory_space<vmem>>, vector<1x1x16xf32>
    %cst = arith.constant 4.000000e-02 : f32
    %2 = vector.broadcast %cst : f32 to vector<1x1x16xf32>
    %3 = arith.mulf %1, %2 : vector<1x1x16xf32>
    %c0_5 = arith.constant 0 : index
    %c0_6 = arith.constant 0 : index
    %c0_7 = arith.constant 0 : index
    %4 = vector.load %arg4[%c0_5, %c0_6, %c0_7] : memref<1x1x16xf32, #tpu.memory_space<vmem>>, vector<1x1x16xf32>
    %cst_8 = arith.constant 4.000000e-02 : f32
    %5 = vector.broadcast %cst_8 : f32 to vector<1x1x16xf32>
    %6 = arith.mulf %4, %5 : vector<1x1x16xf32>
    %7 = arith.mulf %3, %3 : vector<1x1x16xf32>
    %8 = arith.subf %6, %7 : vector<1x1x16xf32>
    %cst_9 = arith.constant 0.000000e+00 : f32
    %9 = vector.broadcast %cst_9 : f32 to vector<1x1x16xf32>
    %10 = arith.maximumf %8, %9 : vector<1x1x16xf32>
    %11 = vector.broadcast %3 : vector<1x1x16xf32> to vector<1x32x16xf32>
    %12 = arith.subf %0, %11 : vector<1x32x16xf32>
    %cst_10 = arith.constant 9.99999974E-6 : f32
    %13 = vector.broadcast %cst_10 : f32 to vector<1x1x16xf32>
    %14 = arith.addf %10, %13 : vector<1x1x16xf32>
    %15 = math.rsqrt %14 : vector<1x1x16xf32>
    %16 = vector.broadcast %15 : vector<1x1x16xf32> to vector<1x32x16xf32>
    %17 = arith.mulf %12, %16 : vector<1x32x16xf32>
    %cst_11 = arith.constant 0.000000e+00 : f32
    %18 = vector.broadcast %cst_11 : f32 to vector<1x32x16xf32>
    %19 = arith.cmpf oge, %17, %18 : vector<1x32x16xf32>
    %cst_12 = arith.constant 2.000000e-01 : f32
    %20 = vector.broadcast %cst_12 : f32 to vector<1x32x16xf32>
    %21 = arith.mulf %20, %17 : vector<1x32x16xf32>
    %22 = arith.select %19, %17, %21 : vector<1x32x16xi1>, vector<1x32x16xf32>
    %c0_13 = arith.constant 0 : index
    %c0_14 = arith.constant 0 : index
    %c0_15 = arith.constant 0 : index
    %23 = vector.load %arg5[%c0_13, %c0_14, %c0_15] : memref<1x32x16xf32, #tpu.memory_space<vmem>>, vector<1x32x16xf32>
    tpu.vector_store %arg5[%c0_13, %c0_14, %c0_15], %22 {strides = array<i32>} : memref<1x32x16xf32, #tpu.memory_space<vmem>>, vector<1x32x16xf32>,
    return
  }
  func.func @transform_0(%arg0: i32, %arg1: i32) -> (i32, i32, i32) {
    %c0_i32 = arith.constant 0 : i32
    %c0_i32_0 = arith.constant 0 : i32
    return %arg0, %arg1, %c0_i32 : i32, i32, i32
  }
  func.func @transform_1(%arg0: i32, %arg1: i32) -> (i32, i32, i32) {
    %c0_i32 = arith.constant 0 : i32
    %c0_i32_0 = arith.constant 0 : i32
    %c0_i32_1 = arith.constant 0 : i32
    return %arg0, %c0_i32, %c0_i32_0 : i32, i32, i32
  }
  func.func @transform_2(%arg0: i32, %arg1: i32) -> (i32, i32, i32) {
    %c0_i32 = arith.constant 0 : i32
    %c0_i32_0 = arith.constant 0 : i32
    %c0_i32_1 = arith.constant 0 : i32
    return %arg0, %c0_i32, %c0_i32_0 : i32, i32, i32
  }
  func.func @transform_3(%arg0: i32, %arg1: i32) -> (i32, i32, i32) {
    %c0_i32 = arith.constant 0 : i32
    %c0_i32_0 = arith.constant 0 : i32
    return %arg0, %arg1, %c0_i32 : i32, i32, i32
  }
}

module attributes {stable_mosaic.version = 11 : i64} {
  func.func @_conv_mm_kernel(%arg0: i32, %arg1: i32, %arg2: i32, %arg3: memref<24x256xbf16, #tpu.memory_space<vmem>>, %arg4: memref<256x128xbf16, #tpu.memory_space<vmem>>, %arg5: memref<1x128xf32, #tpu.memory_space<vmem>>, %arg6: memref<24x128xf32, #tpu.memory_space<vmem>>, %arg7: memref<24x128xf32, #tpu.memory_space<vmem>>) attributes {dimension_semantics = [#tpu.dimension_semantics<parallel>, #tpu.dimension_semantics<parallel>, #tpu.dimension_semantics<arbitrary>], iteration_bounds = array<i64: 1, 1, 1>, scalar_prefetch = 0 : i64, scratch_operands = 1 : i64, tpu.core_type = #tpu.core_type<tc>, window_params = [{transform_indices = @transform_0, window_bounds = array<i64: 24, 256>}, {transform_indices = @transform_1, window_bounds = array<i64: 256, 128>}, {transform_indices = @transform_2, window_bounds = array<i64: 1, 128>}, {transform_indices = @transform_3, window_bounds = array<i64: 24, 128>}]} {
    %c0_i32 = arith.constant 0 : i32
    %0 = arith.cmpi eq, %arg2, %c0_i32 : i32
    %1 = arith.extui %0 : i1 to i32
    %c0_i32_0 = arith.constant 0 : i32
    %2 = arith.cmpi ne, %1, %c0_i32_0 : i32
    scf.if %2 {
      %cst_10 = arith.constant 0.000000e+00 : f32
      %12 = vector.broadcast %cst_10 : f32 to vector<24x128xf32>
      %c0_11 = arith.constant 0 : index
      %c0_12 = arith.constant 0 : index
      %13 = vector.load %arg7[%c0_11, %c0_12] : memref<24x128xf32, #tpu.memory_space<vmem>>, vector<24x128xf32>
      tpu.vector_store %arg7[%c0_11, %c0_12], %12 {strides = array<i32>} : memref<24x128xf32, #tpu.memory_space<vmem>>, vector<24x128xf32>,
    } else {
    }
    %c0 = arith.constant 0 : index
    %c0_1 = arith.constant 0 : index
    %3 = vector.load %arg7[%c0, %c0_1] : memref<24x128xf32, #tpu.memory_space<vmem>>, vector<24x128xf32>
    %c0_2 = arith.constant 0 : index
    %c0_3 = arith.constant 0 : index
    %4 = vector.load %arg3[%c0_2, %c0_3] : memref<24x256xbf16, #tpu.memory_space<vmem>>, vector<24x256xbf16>
    %c0_4 = arith.constant 0 : index
    %c0_5 = arith.constant 0 : index
    %5 = vector.load %arg4[%c0_4, %c0_5] : memref<256x128xbf16, #tpu.memory_space<vmem>>, vector<256x128xbf16>
    %cst = arith.constant dense<0.000000e+00> : vector<24x128xf32>
    %6 = tpu.matmul %4, %5, %cst {dimension_numbers = #tpu.dot_dimension_numbers<[1], [0], [0], [1], [0, 0, 1, 1], [], []>} : vector<24x256xbf16>, vector<256x128xbf16>, vector<24x128xf32> -> vector<24x128xf32>
    %7 = arith.addf %3, %6 : vector<24x128xf32>
    %c0_6 = arith.constant 0 : index
    %c0_7 = arith.constant 0 : index
    %8 = vector.load %arg7[%c0_6, %c0_7] : memref<24x128xf32, #tpu.memory_space<vmem>>, vector<24x128xf32>
    tpu.vector_store %arg7[%c0_6, %c0_7], %7 {strides = array<i32>} : memref<24x128xf32, #tpu.memory_space<vmem>>, vector<24x128xf32>,
    %c0_i32_8 = arith.constant 0 : i32
    %9 = arith.cmpi eq, %arg2, %c0_i32_8 : i32
    %10 = arith.extui %9 : i1 to i32
    %c0_i32_9 = arith.constant 0 : i32
    %11 = arith.cmpi ne, %10, %c0_i32_9 : i32
    scf.if %11 {
      %c0_10 = arith.constant 0 : index
      %c0_11 = arith.constant 0 : index
      %12 = vector.load %arg7[%c0_10, %c0_11] : memref<24x128xf32, #tpu.memory_space<vmem>>, vector<24x128xf32>
      %c0_12 = arith.constant 0 : index
      %c0_13 = arith.constant 0 : index
      %13 = vector.load %arg5[%c0_12, %c0_13] : memref<1x128xf32, #tpu.memory_space<vmem>>, vector<1x128xf32>
      %14 = vector.broadcast %13 : vector<1x128xf32> to vector<24x128xf32>
      %15 = arith.addf %12, %14 : vector<24x128xf32>
      %c0_14 = arith.constant 0 : index
      %c0_15 = arith.constant 0 : index
      %16 = vector.load %arg6[%c0_14, %c0_15] : memref<24x128xf32, #tpu.memory_space<vmem>>, vector<24x128xf32>
      tpu.vector_store %arg6[%c0_14, %c0_15], %15 {strides = array<i32>} : memref<24x128xf32, #tpu.memory_space<vmem>>, vector<24x128xf32>,
    } else {
    }
    return
  }
  func.func @transform_0(%arg0: i32, %arg1: i32, %arg2: i32) -> (i32, i32) {
    %c0_i32 = arith.constant 0 : i32
    return %arg0, %arg2 : i32, i32
  }
  func.func @transform_1(%arg0: i32, %arg1: i32, %arg2: i32) -> (i32, i32) {
    %c0_i32 = arith.constant 0 : i32
    return %arg2, %arg1 : i32, i32
  }
  func.func @transform_2(%arg0: i32, %arg1: i32, %arg2: i32) -> (i32, i32) {
    %c0_i32 = arith.constant 0 : i32
    %c0_i32_0 = arith.constant 0 : i32
    return %c0_i32, %arg1 : i32, i32
  }
  func.func @transform_3(%arg0: i32, %arg1: i32, %arg2: i32) -> (i32, i32) {
    %c0_i32 = arith.constant 0 : i32
    return %arg0, %arg1 : i32, i32
  }
}

module attributes {stable_mosaic.version = 11 : i64} {
  func.func @_in_stats_kernel(%arg0: i32, %arg1: i32, %arg2: memref<1x16x32xf32, #tpu.memory_space<vmem>>, %arg3: memref<1x1x32xf32, #tpu.memory_space<vmem>>, %arg4: memref<1x1x32xf32, #tpu.memory_space<vmem>>) attributes {dimension_semantics = [#tpu.dimension_semantics<parallel>, #tpu.dimension_semantics<arbitrary>], iteration_bounds = array<i64: 2, 1>, scalar_prefetch = 0 : i64, scratch_operands = 0 : i64, tpu.core_type = #tpu.core_type<tc>, window_params = [{transform_indices = @transform_0, window_bounds = array<i64: 1, 16, 32>}, {transform_indices = @transform_1, window_bounds = array<i64: 1, 1, 32>}, {transform_indices = @transform_2, window_bounds = array<i64: 1, 1, 32>}]} {
    %c0_i32 = arith.constant 0 : i32
    %0 = arith.cmpi eq, %arg1, %c0_i32 : i32
    %1 = arith.extui %0 : i1 to i32
    %c0_i32_0 = arith.constant 0 : i32
    %2 = arith.cmpi ne, %1, %c0_i32_0 : i32
    scf.if %2 {
      %cst_16 = arith.constant 0.000000e+00 : f32
      %15 = vector.broadcast %cst_16 : f32 to vector<1x1x32xf32>
      %c0_17 = arith.constant 0 : index
      %c0_18 = arith.constant 0 : index
      %c0_19 = arith.constant 0 : index
      %16 = vector.load %arg3[%c0_17, %c0_18, %c0_19] : memref<1x1x32xf32, #tpu.memory_space<vmem>>, vector<1x1x32xf32>
      tpu.vector_store %arg3[%c0_17, %c0_18, %c0_19], %15 {strides = array<i32>} : memref<1x1x32xf32, #tpu.memory_space<vmem>>, vector<1x1x32xf32>,
      %cst_20 = arith.constant 0.000000e+00 : f32
      %17 = vector.broadcast %cst_20 : f32 to vector<1x1x32xf32>
      %c0_21 = arith.constant 0 : index
      %c0_22 = arith.constant 0 : index
      %c0_23 = arith.constant 0 : index
      %18 = vector.load %arg4[%c0_21, %c0_22, %c0_23] : memref<1x1x32xf32, #tpu.memory_space<vmem>>, vector<1x1x32xf32>
      tpu.vector_store %arg4[%c0_21, %c0_22, %c0_23], %17 {strides = array<i32>} : memref<1x1x32xf32, #tpu.memory_space<vmem>>, vector<1x1x32xf32>,
    } else {
    }
    %c0 = arith.constant 0 : index
    %c0_1 = arith.constant 0 : index
    %c0_2 = arith.constant 0 : index
    %3 = vector.load %arg2[%c0, %c0_1, %c0_2] : memref<1x16x32xf32, #tpu.memory_space<vmem>>, vector<1x16x32xf32>
    %c0_3 = arith.constant 0 : index
    %c0_4 = arith.constant 0 : index
    %c0_5 = arith.constant 0 : index
    %4 = vector.load %arg3[%c0_3, %c0_4, %c0_5] : memref<1x1x32xf32, #tpu.memory_space<vmem>>, vector<1x1x32xf32>
    %cst = arith.constant dense<0.000000e+00> : vector<1x32xf32>
    %5 = vector.multi_reduction <add>, %3, %cst [1] : vector<1x16x32xf32> to vector<1x32xf32>
    %6 = vector.shape_cast %5 : vector<1x32xf32> to vector<1x1x32xf32>
    %7 = arith.addf %4, %6 : vector<1x1x32xf32>
    %c0_6 = arith.constant 0 : index
    %c0_7 = arith.constant 0 : index
    %c0_8 = arith.constant 0 : index
    %8 = vector.load %arg3[%c0_6, %c0_7, %c0_8] : memref<1x1x32xf32, #tpu.memory_space<vmem>>, vector<1x1x32xf32>
    tpu.vector_store %arg3[%c0_6, %c0_7, %c0_8], %7 {strides = array<i32>} : memref<1x1x32xf32, #tpu.memory_space<vmem>>, vector<1x1x32xf32>,
    %c0_9 = arith.constant 0 : index
    %c0_10 = arith.constant 0 : index
    %c0_11 = arith.constant 0 : index
    %9 = vector.load %arg4[%c0_9, %c0_10, %c0_11] : memref<1x1x32xf32, #tpu.memory_space<vmem>>, vector<1x1x32xf32>
    %10 = arith.mulf %3, %3 : vector<1x16x32xf32>
    %cst_12 = arith.constant dense<0.000000e+00> : vector<1x32xf32>
    %11 = vector.multi_reduction <add>, %10, %cst_12 [1] : vector<1x16x32xf32> to vector<1x32xf32>
    %12 = vector.shape_cast %11 : vector<1x32xf32> to vector<1x1x32xf32>
    %13 = arith.addf %9, %12 : vector<1x1x32xf32>
    %c0_13 = arith.constant 0 : index
    %c0_14 = arith.constant 0 : index
    %c0_15 = arith.constant 0 : index
    %14 = vector.load %arg4[%c0_13, %c0_14, %c0_15] : memref<1x1x32xf32, #tpu.memory_space<vmem>>, vector<1x1x32xf32>
    tpu.vector_store %arg4[%c0_13, %c0_14, %c0_15], %13 {strides = array<i32>} : memref<1x1x32xf32, #tpu.memory_space<vmem>>, vector<1x1x32xf32>,
    return
  }
  func.func @transform_0(%arg0: i32, %arg1: i32) -> (i32, i32, i32) {
    %c0_i32 = arith.constant 0 : i32
    %c0_i32_0 = arith.constant 0 : i32
    return %arg0, %arg1, %c0_i32 : i32, i32, i32
  }
  func.func @transform_1(%arg0: i32, %arg1: i32) -> (i32, i32, i32) {
    %c0_i32 = arith.constant 0 : i32
    %c0_i32_0 = arith.constant 0 : i32
    %c0_i32_1 = arith.constant 0 : i32
    return %arg0, %c0_i32, %c0_i32_0 : i32, i32, i32
  }
  func.func @transform_2(%arg0: i32, %arg1: i32) -> (i32, i32, i32) {
    %c0_i32 = arith.constant 0 : i32
    %c0_i32_0 = arith.constant 0 : i32
    %c0_i32_1 = arith.constant 0 : i32
    return %arg0, %c0_i32, %c0_i32_0 : i32, i32, i32
  }
}

module attributes {stable_mosaic.version = 11 : i64} {
  func.func @_in_apply_kernel(%arg0: i32, %arg1: i32, %arg2: memref<1x16x32xf32, #tpu.memory_space<vmem>>, %arg3: memref<1x1x32xf32, #tpu.memory_space<vmem>>, %arg4: memref<1x1x32xf32, #tpu.memory_space<vmem>>, %arg5: memref<1x16x32xf32, #tpu.memory_space<vmem>>) attributes {dimension_semantics = [#tpu.dimension_semantics<parallel>, #tpu.dimension_semantics<parallel>], iteration_bounds = array<i64: 2, 1>, scalar_prefetch = 0 : i64, scratch_operands = 0 : i64, tpu.core_type = #tpu.core_type<tc>, window_params = [{transform_indices = @transform_0, window_bounds = array<i64: 1, 16, 32>}, {transform_indices = @transform_1, window_bounds = array<i64: 1, 1, 32>}, {transform_indices = @transform_2, window_bounds = array<i64: 1, 1, 32>}, {transform_indices = @transform_3, window_bounds = array<i64: 1, 16, 32>}]} {
    %c0 = arith.constant 0 : index
    %c0_0 = arith.constant 0 : index
    %c0_1 = arith.constant 0 : index
    %0 = vector.load %arg2[%c0, %c0_0, %c0_1] : memref<1x16x32xf32, #tpu.memory_space<vmem>>, vector<1x16x32xf32>
    %c0_2 = arith.constant 0 : index
    %c0_3 = arith.constant 0 : index
    %c0_4 = arith.constant 0 : index
    %1 = vector.load %arg3[%c0_2, %c0_3, %c0_4] : memref<1x1x32xf32, #tpu.memory_space<vmem>>, vector<1x1x32xf32>
    %cst = arith.constant 0.111111112 : f32
    %2 = vector.broadcast %cst : f32 to vector<1x1x32xf32>
    %3 = arith.mulf %1, %2 : vector<1x1x32xf32>
    %c0_5 = arith.constant 0 : index
    %c0_6 = arith.constant 0 : index
    %c0_7 = arith.constant 0 : index
    %4 = vector.load %arg4[%c0_5, %c0_6, %c0_7] : memref<1x1x32xf32, #tpu.memory_space<vmem>>, vector<1x1x32xf32>
    %cst_8 = arith.constant 0.111111112 : f32
    %5 = vector.broadcast %cst_8 : f32 to vector<1x1x32xf32>
    %6 = arith.mulf %4, %5 : vector<1x1x32xf32>
    %7 = arith.mulf %3, %3 : vector<1x1x32xf32>
    %8 = arith.subf %6, %7 : vector<1x1x32xf32>
    %cst_9 = arith.constant 0.000000e+00 : f32
    %9 = vector.broadcast %cst_9 : f32 to vector<1x1x32xf32>
    %10 = arith.maximumf %8, %9 : vector<1x1x32xf32>
    %11 = vector.broadcast %3 : vector<1x1x32xf32> to vector<1x16x32xf32>
    %12 = arith.subf %0, %11 : vector<1x16x32xf32>
    %cst_10 = arith.constant 9.99999974E-6 : f32
    %13 = vector.broadcast %cst_10 : f32 to vector<1x1x32xf32>
    %14 = arith.addf %10, %13 : vector<1x1x32xf32>
    %15 = math.rsqrt %14 : vector<1x1x32xf32>
    %16 = vector.broadcast %15 : vector<1x1x32xf32> to vector<1x16x32xf32>
    %17 = arith.mulf %12, %16 : vector<1x16x32xf32>
    %cst_11 = arith.constant 0.000000e+00 : f32
    %18 = vector.broadcast %cst_11 : f32 to vector<1x16x32xf32>
    %19 = arith.cmpf oge, %17, %18 : vector<1x16x32xf32>
    %cst_12 = arith.constant 2.000000e-01 : f32
    %20 = vector.broadcast %cst_12 : f32 to vector<1x16x32xf32>
    %21 = arith.mulf %20, %17 : vector<1x16x32xf32>
    %22 = arith.select %19, %17, %21 : vector<1x16x32xi1>, vector<1x16x32xf32>
    %c0_13 = arith.constant 0 : index
    %c0_14 = arith.constant 0 : index
    %c0_15 = arith.constant 0 : index
    %23 = vector.load %arg5[%c0_13, %c0_14, %c0_15] : memref<1x16x32xf32, #tpu.memory_space<vmem>>, vector<1x16x32xf32>
    tpu.vector_store %arg5[%c0_13, %c0_14, %c0_15], %22 {strides = array<i32>} : memref<1x16x32xf32, #tpu.memory_space<vmem>>, vector<1x16x32xf32>,
    return
  }
  func.func @transform_0(%arg0: i32, %arg1: i32) -> (i32, i32, i32) {
    %c0_i32 = arith.constant 0 : i32
    %c0_i32_0 = arith.constant 0 : i32
    return %arg0, %arg1, %c0_i32 : i32, i32, i32
  }
  func.func @transform_1(%arg0: i32, %arg1: i32) -> (i32, i32, i32) {
    %c0_i32 = arith.constant 0 : i32
    %c0_i32_0 = arith.constant 0 : i32
    %c0_i32_1 = arith.constant 0 : i32
    return %arg0, %c0_i32, %c0_i32_0 : i32, i32, i32
  }
  func.func @transform_2(%arg0: i32, %arg1: i32) -> (i32, i32, i32) {
    %c0_i32 = arith.constant 0 : i32
    %c0_i32_0 = arith.constant 0 : i32
    %c0_i32_1 = arith.constant 0 : i32
    return %arg0, %c0_i32, %c0_i32_0 : i32, i32, i32
  }
  func.func @transform_3(%arg0: i32, %arg1: i32) -> (i32, i32, i32) {
    %c0_i32 = arith.constant 0 : i32
    %c0_i32_0 = arith.constant 0 : i32
    return %arg0, %arg1, %c0_i32 : i32, i32, i32
  }
}

module attributes {stable_mosaic.version = 11 : i64} {
  func.func @_conv_mm_kernel(%arg0: i32, %arg1: i32, %arg2: i32, %arg3: memref<32x512xbf16, #tpu.memory_space<vmem>>, %arg4: memref<512x128xbf16, #tpu.memory_space<vmem>>, %arg5: memref<1x128xf32, #tpu.memory_space<vmem>>, %arg6: memref<32x128xf32, #tpu.memory_space<vmem>>, %arg7: memref<32x128xf32, #tpu.memory_space<vmem>>) attributes {dimension_semantics = [#tpu.dimension_semantics<parallel>, #tpu.dimension_semantics<parallel>, #tpu.dimension_semantics<arbitrary>], iteration_bounds = array<i64: 1, 1, 1>, scalar_prefetch = 0 : i64, scratch_operands = 1 : i64, tpu.core_type = #tpu.core_type<tc>, window_params = [{transform_indices = @transform_0, window_bounds = array<i64: 32, 512>}, {transform_indices = @transform_1, window_bounds = array<i64: 512, 128>}, {transform_indices = @transform_2, window_bounds = array<i64: 1, 128>}, {transform_indices = @transform_3, window_bounds = array<i64: 32, 128>}]} {
    %c0_i32 = arith.constant 0 : i32
    %0 = arith.cmpi eq, %arg2, %c0_i32 : i32
    %1 = arith.extui %0 : i1 to i32
    %c0_i32_0 = arith.constant 0 : i32
    %2 = arith.cmpi ne, %1, %c0_i32_0 : i32
    scf.if %2 {
      %cst_10 = arith.constant 0.000000e+00 : f32
      %12 = vector.broadcast %cst_10 : f32 to vector<32x128xf32>
      %c0_11 = arith.constant 0 : index
      %c0_12 = arith.constant 0 : index
      %13 = vector.load %arg7[%c0_11, %c0_12] : memref<32x128xf32, #tpu.memory_space<vmem>>, vector<32x128xf32>
      tpu.vector_store %arg7[%c0_11, %c0_12], %12 {strides = array<i32>} : memref<32x128xf32, #tpu.memory_space<vmem>>, vector<32x128xf32>,
    } else {
    }
    %c0 = arith.constant 0 : index
    %c0_1 = arith.constant 0 : index
    %3 = vector.load %arg7[%c0, %c0_1] : memref<32x128xf32, #tpu.memory_space<vmem>>, vector<32x128xf32>
    %c0_2 = arith.constant 0 : index
    %c0_3 = arith.constant 0 : index
    %4 = vector.load %arg3[%c0_2, %c0_3] : memref<32x512xbf16, #tpu.memory_space<vmem>>, vector<32x512xbf16>
    %c0_4 = arith.constant 0 : index
    %c0_5 = arith.constant 0 : index
    %5 = vector.load %arg4[%c0_4, %c0_5] : memref<512x128xbf16, #tpu.memory_space<vmem>>, vector<512x128xbf16>
    %cst = arith.constant dense<0.000000e+00> : vector<32x128xf32>
    %6 = tpu.matmul %4, %5, %cst {dimension_numbers = #tpu.dot_dimension_numbers<[1], [0], [0], [1], [0, 0, 1, 1], [], []>} : vector<32x512xbf16>, vector<512x128xbf16>, vector<32x128xf32> -> vector<32x128xf32>
    %7 = arith.addf %3, %6 : vector<32x128xf32>
    %c0_6 = arith.constant 0 : index
    %c0_7 = arith.constant 0 : index
    %8 = vector.load %arg7[%c0_6, %c0_7] : memref<32x128xf32, #tpu.memory_space<vmem>>, vector<32x128xf32>
    tpu.vector_store %arg7[%c0_6, %c0_7], %7 {strides = array<i32>} : memref<32x128xf32, #tpu.memory_space<vmem>>, vector<32x128xf32>,
    %c0_i32_8 = arith.constant 0 : i32
    %9 = arith.cmpi eq, %arg2, %c0_i32_8 : i32
    %10 = arith.extui %9 : i1 to i32
    %c0_i32_9 = arith.constant 0 : i32
    %11 = arith.cmpi ne, %10, %c0_i32_9 : i32
    scf.if %11 {
      %c0_10 = arith.constant 0 : index
      %c0_11 = arith.constant 0 : index
      %12 = vector.load %arg7[%c0_10, %c0_11] : memref<32x128xf32, #tpu.memory_space<vmem>>, vector<32x128xf32>
      %c0_12 = arith.constant 0 : index
      %c0_13 = arith.constant 0 : index
      %13 = vector.load %arg5[%c0_12, %c0_13] : memref<1x128xf32, #tpu.memory_space<vmem>>, vector<1x128xf32>
      %14 = vector.broadcast %13 : vector<1x128xf32> to vector<32x128xf32>
      %15 = arith.addf %12, %14 : vector<32x128xf32>
      %c0_14 = arith.constant 0 : index
      %c0_15 = arith.constant 0 : index
      %16 = vector.load %arg6[%c0_14, %c0_15] : memref<32x128xf32, #tpu.memory_space<vmem>>, vector<32x128xf32>
      tpu.vector_store %arg6[%c0_14, %c0_15], %15 {strides = array<i32>} : memref<32x128xf32, #tpu.memory_space<vmem>>, vector<32x128xf32>,
    } else {
    }
    return
  }
  func.func @transform_0(%arg0: i32, %arg1: i32, %arg2: i32) -> (i32, i32) {
    %c0_i32 = arith.constant 0 : i32
    return %arg0, %arg2 : i32, i32
  }
  func.func @transform_1(%arg0: i32, %arg1: i32, %arg2: i32) -> (i32, i32) {
    %c0_i32 = arith.constant 0 : i32
    return %arg2, %arg1 : i32, i32
  }
  func.func @transform_2(%arg0: i32, %arg1: i32, %arg2: i32) -> (i32, i32) {
    %c0_i32 = arith.constant 0 : i32
    %c0_i32_0 = arith.constant 0 : i32
    return %c0_i32, %arg1 : i32, i32
  }
  func.func @transform_3(%arg0: i32, %arg1: i32, %arg2: i32) -> (i32, i32) {
    %c0_i32 = arith.constant 0 : i32
    return %arg0, %arg1 : i32, i32
  }
}

module attributes {stable_mosaic.version = 11 : i64} {
  func.func @_in_apply_kernel(%arg0: i32, %arg1: i32, %arg2: memref<1x16x64xf32, #tpu.memory_space<vmem>>, %arg3: memref<1x1x64xf32, #tpu.memory_space<vmem>>, %arg4: memref<1x1x64xf32, #tpu.memory_space<vmem>>, %arg5: memref<1x16x64xf32, #tpu.memory_space<vmem>>) attributes {dimension_semantics = [#tpu.dimension_semantics<parallel>, #tpu.dimension_semantics<parallel>], iteration_bounds = array<i64: 2, 1>, scalar_prefetch = 0 : i64, scratch_operands = 0 : i64, tpu.core_type = #tpu.core_type<tc>, window_params = [{transform_indices = @transform_0, window_bounds = array<i64: 1, 16, 64>}, {transform_indices = @transform_1, window_bounds = array<i64: 1, 1, 64>}, {transform_indices = @transform_2, window_bounds = array<i64: 1, 1, 64>}, {transform_indices = @transform_3, window_bounds = array<i64: 1, 16, 64>}]} {
    %c0 = arith.constant 0 : index
    %c0_0 = arith.constant 0 : index
    %c0_1 = arith.constant 0 : index
    %0 = vector.load %arg2[%c0, %c0_0, %c0_1] : memref<1x16x64xf32, #tpu.memory_space<vmem>>, vector<1x16x64xf32>
    %c0_2 = arith.constant 0 : index
    %c0_3 = arith.constant 0 : index
    %c0_4 = arith.constant 0 : index
    %1 = vector.load %arg3[%c0_2, %c0_3, %c0_4] : memref<1x1x64xf32, #tpu.memory_space<vmem>>, vector<1x1x64xf32>
    %cst = arith.constant 6.250000e-02 : f32
    %2 = vector.broadcast %cst : f32 to vector<1x1x64xf32>
    %3 = arith.mulf %1, %2 : vector<1x1x64xf32>
    %c0_5 = arith.constant 0 : index
    %c0_6 = arith.constant 0 : index
    %c0_7 = arith.constant 0 : index
    %4 = vector.load %arg4[%c0_5, %c0_6, %c0_7] : memref<1x1x64xf32, #tpu.memory_space<vmem>>, vector<1x1x64xf32>
    %cst_8 = arith.constant 6.250000e-02 : f32
    %5 = vector.broadcast %cst_8 : f32 to vector<1x1x64xf32>
    %6 = arith.mulf %4, %5 : vector<1x1x64xf32>
    %7 = arith.mulf %3, %3 : vector<1x1x64xf32>
    %8 = arith.subf %6, %7 : vector<1x1x64xf32>
    %cst_9 = arith.constant 0.000000e+00 : f32
    %9 = vector.broadcast %cst_9 : f32 to vector<1x1x64xf32>
    %10 = arith.maximumf %8, %9 : vector<1x1x64xf32>
    %11 = vector.broadcast %3 : vector<1x1x64xf32> to vector<1x16x64xf32>
    %12 = arith.subf %0, %11 : vector<1x16x64xf32>
    %cst_10 = arith.constant 9.99999974E-6 : f32
    %13 = vector.broadcast %cst_10 : f32 to vector<1x1x64xf32>
    %14 = arith.addf %10, %13 : vector<1x1x64xf32>
    %15 = math.rsqrt %14 : vector<1x1x64xf32>
    %16 = vector.broadcast %15 : vector<1x1x64xf32> to vector<1x16x64xf32>
    %17 = arith.mulf %12, %16 : vector<1x16x64xf32>
    %cst_11 = arith.constant 0.000000e+00 : f32
    %18 = vector.broadcast %cst_11 : f32 to vector<1x16x64xf32>
    %19 = arith.cmpf oge, %17, %18 : vector<1x16x64xf32>
    %cst_12 = arith.constant 2.000000e-01 : f32
    %20 = vector.broadcast %cst_12 : f32 to vector<1x16x64xf32>
    %21 = arith.mulf %20, %17 : vector<1x16x64xf32>
    %22 = arith.select %19, %17, %21 : vector<1x16x64xi1>, vector<1x16x64xf32>
    %c0_13 = arith.constant 0 : index
    %c0_14 = arith.constant 0 : index
    %c0_15 = arith.constant 0 : index
    %23 = vector.load %arg5[%c0_13, %c0_14, %c0_15] : memref<1x16x64xf32, #tpu.memory_space<vmem>>, vector<1x16x64xf32>
    tpu.vector_store %arg5[%c0_13, %c0_14, %c0_15], %22 {strides = array<i32>} : memref<1x16x64xf32, #tpu.memory_space<vmem>>, vector<1x16x64xf32>,
    return
  }
  func.func @transform_0(%arg0: i32, %arg1: i32) -> (i32, i32, i32) {
    %c0_i32 = arith.constant 0 : i32
    %c0_i32_0 = arith.constant 0 : i32
    return %arg0, %arg1, %c0_i32 : i32, i32, i32
  }
  func.func @transform_1(%arg0: i32, %arg1: i32) -> (i32, i32, i32) {
    %c0_i32 = arith.constant 0 : i32
    %c0_i32_0 = arith.constant 0 : i32
    %c0_i32_1 = arith.constant 0 : i32
    return %arg0, %c0_i32, %c0_i32_0 : i32, i32, i32
  }
  func.func @transform_2(%arg0: i32, %arg1: i32) -> (i32, i32, i32) {
    %c0_i32 = arith.constant 0 : i32
    %c0_i32_0 = arith.constant 0 : i32
    %c0_i32_1 = arith.constant 0 : i32
    return %arg0, %c0_i32, %c0_i32_0 : i32, i32, i32
  }
  func.func @transform_3(%arg0: i32, %arg1: i32) -> (i32, i32, i32) {
    %c0_i32 = arith.constant 0 : i32
    %c0_i32_0 = arith.constant 0 : i32
    return %arg0, %arg1, %c0_i32 : i32, i32, i32
  }
}

module attributes {stable_mosaic.version = 11 : i64} {
  func.func @_in_stats_kernel(%arg0: i32, %arg1: i32, %arg2: memref<1x16x64xf32, #tpu.memory_space<vmem>>, %arg3: memref<1x1x64xf32, #tpu.memory_space<vmem>>, %arg4: memref<1x1x64xf32, #tpu.memory_space<vmem>>) attributes {dimension_semantics = [#tpu.dimension_semantics<parallel>, #tpu.dimension_semantics<arbitrary>], iteration_bounds = array<i64: 2, 1>, scalar_prefetch = 0 : i64, scratch_operands = 0 : i64, tpu.core_type = #tpu.core_type<tc>, window_params = [{transform_indices = @transform_0, window_bounds = array<i64: 1, 16, 64>}, {transform_indices = @transform_1, window_bounds = array<i64: 1, 1, 64>}, {transform_indices = @transform_2, window_bounds = array<i64: 1, 1, 64>}]} {
    %c0_i32 = arith.constant 0 : i32
    %0 = arith.cmpi eq, %arg1, %c0_i32 : i32
    %1 = arith.extui %0 : i1 to i32
    %c0_i32_0 = arith.constant 0 : i32
    %2 = arith.cmpi ne, %1, %c0_i32_0 : i32
    scf.if %2 {
      %cst_16 = arith.constant 0.000000e+00 : f32
      %15 = vector.broadcast %cst_16 : f32 to vector<1x1x64xf32>
      %c0_17 = arith.constant 0 : index
      %c0_18 = arith.constant 0 : index
      %c0_19 = arith.constant 0 : index
      %16 = vector.load %arg3[%c0_17, %c0_18, %c0_19] : memref<1x1x64xf32, #tpu.memory_space<vmem>>, vector<1x1x64xf32>
      tpu.vector_store %arg3[%c0_17, %c0_18, %c0_19], %15 {strides = array<i32>} : memref<1x1x64xf32, #tpu.memory_space<vmem>>, vector<1x1x64xf32>,
      %cst_20 = arith.constant 0.000000e+00 : f32
      %17 = vector.broadcast %cst_20 : f32 to vector<1x1x64xf32>
      %c0_21 = arith.constant 0 : index
      %c0_22 = arith.constant 0 : index
      %c0_23 = arith.constant 0 : index
      %18 = vector.load %arg4[%c0_21, %c0_22, %c0_23] : memref<1x1x64xf32, #tpu.memory_space<vmem>>, vector<1x1x64xf32>
      tpu.vector_store %arg4[%c0_21, %c0_22, %c0_23], %17 {strides = array<i32>} : memref<1x1x64xf32, #tpu.memory_space<vmem>>, vector<1x1x64xf32>,
    } else {
    }
    %c0 = arith.constant 0 : index
    %c0_1 = arith.constant 0 : index
    %c0_2 = arith.constant 0 : index
    %3 = vector.load %arg2[%c0, %c0_1, %c0_2] : memref<1x16x64xf32, #tpu.memory_space<vmem>>, vector<1x16x64xf32>
    %c0_3 = arith.constant 0 : index
    %c0_4 = arith.constant 0 : index
    %c0_5 = arith.constant 0 : index
    %4 = vector.load %arg3[%c0_3, %c0_4, %c0_5] : memref<1x1x64xf32, #tpu.memory_space<vmem>>, vector<1x1x64xf32>
    %cst = arith.constant dense<0.000000e+00> : vector<1x64xf32>
    %5 = vector.multi_reduction <add>, %3, %cst [1] : vector<1x16x64xf32> to vector<1x64xf32>
    %6 = vector.shape_cast %5 : vector<1x64xf32> to vector<1x1x64xf32>
    %7 = arith.addf %4, %6 : vector<1x1x64xf32>
    %c0_6 = arith.constant 0 : index
    %c0_7 = arith.constant 0 : index
    %c0_8 = arith.constant 0 : index
    %8 = vector.load %arg3[%c0_6, %c0_7, %c0_8] : memref<1x1x64xf32, #tpu.memory_space<vmem>>, vector<1x1x64xf32>
    tpu.vector_store %arg3[%c0_6, %c0_7, %c0_8], %7 {strides = array<i32>} : memref<1x1x64xf32, #tpu.memory_space<vmem>>, vector<1x1x64xf32>,
    %c0_9 = arith.constant 0 : index
    %c0_10 = arith.constant 0 : index
    %c0_11 = arith.constant 0 : index
    %9 = vector.load %arg4[%c0_9, %c0_10, %c0_11] : memref<1x1x64xf32, #tpu.memory_space<vmem>>, vector<1x1x64xf32>
    %10 = arith.mulf %3, %3 : vector<1x16x64xf32>
    %cst_12 = arith.constant dense<0.000000e+00> : vector<1x64xf32>
    %11 = vector.multi_reduction <add>, %10, %cst_12 [1] : vector<1x16x64xf32> to vector<1x64xf32>
    %12 = vector.shape_cast %11 : vector<1x64xf32> to vector<1x1x64xf32>
    %13 = arith.addf %9, %12 : vector<1x1x64xf32>
    %c0_13 = arith.constant 0 : index
    %c0_14 = arith.constant 0 : index
    %c0_15 = arith.constant 0 : index
    %14 = vector.load %arg4[%c0_13, %c0_14, %c0_15] : memref<1x1x64xf32, #tpu.memory_space<vmem>>, vector<1x1x64xf32>
    tpu.vector_store %arg4[%c0_13, %c0_14, %c0_15], %13 {strides = array<i32>} : memref<1x1x64xf32, #tpu.memory_space<vmem>>, vector<1x1x64xf32>,
    return
  }
  func.func @transform_0(%arg0: i32, %arg1: i32) -> (i32, i32, i32) {
    %c0_i32 = arith.constant 0 : i32
    %c0_i32_0 = arith.constant 0 : i32
    return %arg0, %arg1, %c0_i32 : i32, i32, i32
  }
  func.func @transform_1(%arg0: i32, %arg1: i32) -> (i32, i32, i32) {
    %c0_i32 = arith.constant 0 : i32
    %c0_i32_0 = arith.constant 0 : i32
    %c0_i32_1 = arith.constant 0 : i32
    return %arg0, %c0_i32, %c0_i32_0 : i32, i32, i32
  }
  func.func @transform_2(%arg0: i32, %arg1: i32) -> (i32, i32, i32) {
    %c0_i32 = arith.constant 0 : i32
    %c0_i32_0 = arith.constant 0 : i32
    %c0_i32_1 = arith.constant 0 : i32
    return %arg0, %c0_i32, %c0_i32_0 : i32, i32, i32
  }
}

module attributes {stable_mosaic.version = 11 : i64} {
  func.func @_conv_mm_kernel(%arg0: i32, %arg1: i32, %arg2: i32, %arg3: memref<56x512xbf16, #tpu.memory_space<vmem>>, %arg4: memref<512x128xbf16, #tpu.memory_space<vmem>>, %arg5: memref<1x128xf32, #tpu.memory_space<vmem>>, %arg6: memref<56x128xf32, #tpu.memory_space<vmem>>, %arg7: memref<56x128xf32, #tpu.memory_space<vmem>>) attributes {dimension_semantics = [#tpu.dimension_semantics<parallel>, #tpu.dimension_semantics<parallel>, #tpu.dimension_semantics<arbitrary>], iteration_bounds = array<i64: 1, 1, 2>, scalar_prefetch = 0 : i64, scratch_operands = 1 : i64, tpu.core_type = #tpu.core_type<tc>, window_params = [{transform_indices = @transform_0, window_bounds = array<i64: 56, 512>}, {transform_indices = @transform_1, window_bounds = array<i64: 512, 128>}, {transform_indices = @transform_2, window_bounds = array<i64: 1, 128>}, {transform_indices = @transform_3, window_bounds = array<i64: 56, 128>}]} {
    %c0_i32 = arith.constant 0 : i32
    %0 = arith.cmpi eq, %arg2, %c0_i32 : i32
    %1 = arith.extui %0 : i1 to i32
    %c0_i32_0 = arith.constant 0 : i32
    %2 = arith.cmpi ne, %1, %c0_i32_0 : i32
    scf.if %2 {
      %cst_9 = arith.constant 0.000000e+00 : f32
      %12 = vector.broadcast %cst_9 : f32 to vector<56x128xf32>
      %c0_10 = arith.constant 0 : index
      %c0_11 = arith.constant 0 : index
      %13 = vector.load %arg7[%c0_10, %c0_11] : memref<56x128xf32, #tpu.memory_space<vmem>>, vector<56x128xf32>
      tpu.vector_store %arg7[%c0_10, %c0_11], %12 {strides = array<i32>} : memref<56x128xf32, #tpu.memory_space<vmem>>, vector<56x128xf32>,
    } else {
    }
    %c0 = arith.constant 0 : index
    %c0_1 = arith.constant 0 : index
    %3 = vector.load %arg7[%c0, %c0_1] : memref<56x128xf32, #tpu.memory_space<vmem>>, vector<56x128xf32>
    %c0_2 = arith.constant 0 : index
    %c0_3 = arith.constant 0 : index
    %4 = vector.load %arg3[%c0_2, %c0_3] : memref<56x512xbf16, #tpu.memory_space<vmem>>, vector<56x512xbf16>
    %c0_4 = arith.constant 0 : index
    %c0_5 = arith.constant 0 : index
    %5 = vector.load %arg4[%c0_4, %c0_5] : memref<512x128xbf16, #tpu.memory_space<vmem>>, vector<512x128xbf16>
    %cst = arith.constant dense<0.000000e+00> : vector<56x128xf32>
    %6 = tpu.matmul %4, %5, %cst {dimension_numbers = #tpu.dot_dimension_numbers<[1], [0], [0], [1], [0, 0, 1, 1], [], []>} : vector<56x512xbf16>, vector<512x128xbf16>, vector<56x128xf32> -> vector<56x128xf32>
    %7 = arith.addf %3, %6 : vector<56x128xf32>
    %c0_6 = arith.constant 0 : index
    %c0_7 = arith.constant 0 : index
    %8 = vector.load %arg7[%c0_6, %c0_7] : memref<56x128xf32, #tpu.memory_space<vmem>>, vector<56x128xf32>
    tpu.vector_store %arg7[%c0_6, %c0_7], %7 {strides = array<i32>} : memref<56x128xf32, #tpu.memory_space<vmem>>, vector<56x128xf32>,
    %c1_i32 = arith.constant 1 : i32
    %9 = arith.cmpi eq, %arg2, %c1_i32 : i32
    %10 = arith.extui %9 : i1 to i32
    %c0_i32_8 = arith.constant 0 : i32
    %11 = arith.cmpi ne, %10, %c0_i32_8 : i32
    scf.if %11 {
      %c0_9 = arith.constant 0 : index
      %c0_10 = arith.constant 0 : index
      %12 = vector.load %arg7[%c0_9, %c0_10] : memref<56x128xf32, #tpu.memory_space<vmem>>, vector<56x128xf32>
      %c0_11 = arith.constant 0 : index
      %c0_12 = arith.constant 0 : index
      %13 = vector.load %arg5[%c0_11, %c0_12] : memref<1x128xf32, #tpu.memory_space<vmem>>, vector<1x128xf32>
      %14 = vector.broadcast %13 : vector<1x128xf32> to vector<56x128xf32>
      %15 = arith.addf %12, %14 : vector<56x128xf32>
      %c0_13 = arith.constant 0 : index
      %c0_14 = arith.constant 0 : index
      %16 = vector.load %arg6[%c0_13, %c0_14] : memref<56x128xf32, #tpu.memory_space<vmem>>, vector<56x128xf32>
      tpu.vector_store %arg6[%c0_13, %c0_14], %15 {strides = array<i32>} : memref<56x128xf32, #tpu.memory_space<vmem>>, vector<56x128xf32>,
    } else {
    }
    return
  }
  func.func @transform_0(%arg0: i32, %arg1: i32, %arg2: i32) -> (i32, i32) {
    %c0_i32 = arith.constant 0 : i32
    return %arg0, %arg2 : i32, i32
  }
  func.func @transform_1(%arg0: i32, %arg1: i32, %arg2: i32) -> (i32, i32) {
    %c0_i32 = arith.constant 0 : i32
    return %arg2, %arg1 : i32, i32
  }
  func.func @transform_2(%arg0: i32, %arg1: i32, %arg2: i32) -> (i32, i32) {
    %c0_i32 = arith.constant 0 : i32
    %c0_i32_0 = arith.constant 0 : i32
    return %c0_i32, %arg1 : i32, i32
  }
  func.func @transform_3(%arg0: i32, %arg1: i32, %arg2: i32) -> (i32, i32) {
    %c0_i32 = arith.constant 0 : i32
    return %arg0, %arg1 : i32, i32
  }
}

</mosaic_0001>

<bundles_post_ra>
// kernel: discriminator_forward.11
= control target key start
LH: loop header
LB: loop body
LE: loop exit
PB: predicated region body
PF: predicated region fallthrough
CT: control target
= control target key end

     0   :  { %v648_v0 = vmov 0.0   ;;  %vm649_vm0 = vmmov 0   ;;  %s854_s1 = inlined_call_operand.vmem [shape: bf16[128,128], index: 1, kind: input, shape index: {}]   ;;  %s855_s0 = inlined_call_operand.vmem [shape: bf16[168,128], index: 0, kind: input, shape index: {}]   ;;  %s856_s2 = inlined_call_operand.vmem [shape: f32[1,128], index: 2, kind: input, shape index: {}]   ;;  %s857_s3 = inlined_call_operand.vmem [shape: f32[168,128], index: 3, kind: output, shape index: {}]  }
   0x1   :  { %551 = vmatprep.subr.bf16.mxu0 %v648_v0  ;;  %v629_v1 = vld [vmem:[%s854_s1] sm:$0xff]   ;;  %611 = vmatprep.subr.bf16.mxu1 %v648_v0  ;;  %v630_v2 = vld [vmem:[%s854_s1 + $0x8] sm:$0xff]   ;;  %v631_v3 = vld [vmem:[%s854_s1 + $0x10] sm:$0xff]  }
   0x2   :  { %567 = vmatprep.mubr.msk.bf16.mxu0 %vm649_vm0, %v648_v0  ;;  %591 = vmatprep.mubr.msk.bf16.mxu1 %vm649_vm0, %v648_v0  ;;  %v632_v4 = vld [vmem:[%s854_s1 + $0x18] sm:$0xff]   ;;  %v633_v5 = vld [vmem:[%s854_s1 + $0x20] sm:$0xff]   ;;  %v634_v6 = vld [vmem:[%s854_s1 + $0x28] sm:$0xff]  }
   0x3   :  { %552 = vmatpush3.bf16.msra.mxu0 %v629_v1  ;;  %619 = vmatpush3.bf16.msra.mxu1 %v629_v1  ;;  %v635_v7 = vld [vmem:[%s854_s1 + $0x30] sm:$0xff]   ;;  %v636_v8 = vld [vmem:[%s854_s1 + $0x38] sm:$0xff]   ;;  %v637_v9 = vld [vmem:[%s855_s0] sm:$0xff]  }
   0x4   :  { %553 = vmatprep.subr.bf16.mxu0 %v648_v0  ;;  %612 = vmatprep.subr.bf16.mxu1 %v648_v0  ;;  %v638_v10 = vld [vmem:[%s855_s0 + $0x30] sm:$0xff]   ;;  %v639_v11 = vld [vmem:[%s855_s0 + $0x8] sm:$0xff]   ;;  %v640_v12 = vld [vmem:[%s855_s0 + $0x38] sm:$0xff]  }
   0x5   :  { %v641_v13 = vld [vmem:[%s855_s0 + $0x10] sm:$0xff]   ;;  %v642_v14 = vld [vmem:[%s855_s0 + $0x40] sm:$0xff]   ;;  %v643_v15 = vld [vmem:[%s855_s0 + $0x18] sm:$0xff]  }
   0x6   :  { %v644_v16 = vld [vmem:[%s855_s0 + $0x48] sm:$0xff]   ;;  %v645_v17 = vld [vmem:[%s855_s0 + $0x20] sm:$0xff]   ;;  %v646_v18 = vld [vmem:[%s855_s0 + $0x50] ss:$0 sps:$4 sm:$0xff]  }
   0x7   :  { %554 = vmatpush3.bf16.msra.mxu0 %v630_v2  ;;  %620 = vmatpush3.bf16.msra.mxu1 %v630_v2  ;;  %v647_v19 = vld [vmem:[%s855_s0 + $0x28] sm:$0xff]   ;;  %v768_v20 = vld [vmem:[%s856_s2] ss:$0 sm:$0xff] }
   0x8   :  { %555 = vmatprep.subr.bf16.mxu0 %v648_v0  ;;  %613 = vmatprep.subr.bf16.mxu1 %v648_v0 }
   0xb   :  { %556 = vmatpush3.bf16.msra.mxu0 %v631_v3  ;;  %621 = vmatpush3.bf16.msra.mxu1 %v631_v3 }
   0xc   :  { %557 = vmatprep.subr.bf16.mxu0 %v648_v0  ;;  %614 = vmatprep.subr.bf16.mxu1 %v648_v0 }
   0xf   :  { %558 = vmatpush3.bf16.msra.mxu0 %v632_v4  ;;  %622 = vmatpush3.bf16.msra.mxu1 %v632_v4 }
  0x10   :  { %559 = vmatprep.subr.bf16.mxu0 %v648_v0  ;;  %615 = vmatprep.subr.bf16.mxu1 %v648_v0 }
  0x13   :  { %560 = vmatpush3.bf16.msra.mxu0 %v633_v5  ;;  %623 = vmatpush3.bf16.msra.mxu1 %v633_v5 }
  0x14   :  { %561 = vmatprep.subr.bf16.mxu0 %v648_v0  ;;  %616 = vmatprep.subr.bf16.mxu1 %v648_v0 }
  0x17   :  { %562 = vmatpush3.bf16.msra.mxu0 %v634_v6  ;;  %624 = vmatpush3.bf16.msra.mxu1 %v634_v6 }
  0x18   :  { %563 = vmatprep.subr.bf16.mxu0 %v648_v0  ;;  %617 = vmatprep.subr.bf16.mxu1 %v648_v0 }
  0x1b   :  { %564 = vmatpush3.bf16.msra.mxu0 %v635_v7  ;;  %625 = vmatpush3.bf16.msra.mxu1 %v635_v7 }
  0x1c   :  { %565 = vmatprep.subr.bf16.mxu0 %v648_v0  ;;  %618 = vmatprep.subr.bf16.mxu1 %v648_v0 }
  0x1f   :  { %566 = vmatpush3.bf16.msra.mxu0 %v636_v8  ;;  %626 = vmatpush3.bf16.msra.mxu1 %v636_v8 }
  0x22   :  { %568 = vmatmul.mubr.bf16.vlgmr.msra.gmra.mrb[0].mxu0 %v637_v9  ;;  %592 = vmatmul.mubr.bf16.vlgmr.msra.gmra.mrb[0].mxu1 %v638_v10 }
  0x23   :  { %571 = vmatprep.mubr.msk.bf16.mxu0 %vm649_vm0, %v648_v0  ;;  %595 = vmatprep.mubr.msk.bf16.mxu1 %vm649_vm0, %v648_v0 }
  0x2a   :  { %572 = vmatmul.mubr.bf16.gmra.mrb[4].mxu0 %v639_v11  ;;  %596 = vmatmul.mubr.bf16.gmra.mrb[4].mxu1 %v640_v12 }
  0x2b   :  { %575 = vmatprep.mubr.msk.bf16.mxu0 %vm649_vm0, %v648_v0  ;;  %599 = vmatprep.mubr.msk.bf16.mxu1 %vm649_vm0, %v648_v0 }
  0x32   :  { %576 = vmatmul.mubr.bf16.gmra.mrb[8].mxu0 %v641_v13  ;;  %600 = vmatmul.mubr.bf16.gmra.mrb[8].mxu1 %v642_v14 }
  0x33   :  { %579 = vmatprep.mubr.msk.bf16.mxu0 %vm649_vm0, %v648_v0  ;;  %603 = vmatprep.mubr.msk.bf16.mxu1 %vm649_vm0, %v648_v0 }
  0x3a   :  { %580 = vmatmul.mubr.bf16.gmra.mrb[12].mxu0 %v643_v15  ;;  %604 = vmatmul.mubr.bf16.gmra.mrb[12].mxu1 %v644_v16 }
  0x3b   :  { %583 = vmatprep.mubr.msk.bf16.mxu0 %vm649_vm0, %v648_v0  ;;  %607 = vmatprep.mubr.msk.bf16.mxu1 %vm649_vm0, %v648_v0 }
  0x42   :  { %584 = vmatmul.mubr.bf16.gmra.mrb[16].mxu0 %v645_v17  ;;  %608 = vmatmul.mubr.bf16.gmra.mrb[16].mxu1 %v646_v18 }
  0x43   :  { %587 = vmatprep.mubr.msk.bf16.mxu0 %vm649_vm0, %v648_v0 }
  0x4a   :  { %588 = vmatmul.mubr.bf16.gmra.mrb[20].mxu0 %v647_v19 }
  0xf5   :  { %v244_v21 = vpop.f32.mrb[0].mxu0  ;;  %v292_v22 = vpop.f32.mrb[0].mxu1 }
  0xf6   :  { %v403_v23 = vadd.f32 %v768_v20, %v244_v21  ;;  %v569_v24 = vpop.f32.mrb[1].mxu0  ;;  %v415_v25 = vadd.f32 %v768_v20, %v292_v22  ;;  %v593_v26 = vpop.f32.mrb[1].mxu1 }
  0xf7   :  { %v247_v27 = vpop.f32.mrb[2].mxu0  ;;  %v295_v28 = vpop.f32.mrb[2].mxu1 }
  0xf8   :  { %vm424_vm1 = vcmp.ge.f32.partialorder %v403_v23, 0.0  ;;  %v445_v29 = vmul.f32 0.2, %v403_v23  ;;  %v404_v30 = vadd.f32 %v768_v20, %v247_v27  ;;  %v570_v31 = vpop.f32.mrb[3].mxu0  ;;  %vm436_vm2 = vcmp.ge.f32.partialorder %v415_v25, 0.0  ;;  %v594_v32 = vpop.f32.mrb[3].mxu1 }
  0xf9   :  { %v457_v33 = vmul.f32 0.2, %v415_v25  ;;  %v416_v34 = vadd.f32 %v768_v20, %v295_v28 }
  0xfa   :  { %v466_v35 = vsel %vm424_vm1, %v403_v23, %v445_v29  ;;  %vm425_vm3 = vcmp.ge.f32.partialorder %v404_v30, 0.0  ;;  %v446_v36 = vmul.f32 0.2, %v404_v30 }
  0xfb   :  { %487 = vst [vmem:[%s857_s3] sm:$0xff] %v466_v35  ;;  %v478_v37 = vsel %vm436_vm2, %v415_v25, %v457_v33  ;;  %vm437_vm4 = vcmp.ge.f32.partialorder %v416_v34, 0.0  ;;  %v458_v38 = vmul.f32 0.2, %v416_v34 }
  0xfc   :  { %v467_v39 = vsel %vm425_vm3, %v404_v30, %v446_v36  ;;  %499 = vst [vmem:[%s857_s3 + $0x60] sm:$0xff] %v478_v37 }
  0xfd   :  { %488 = vst [vmem:[%s857_s3 + $0x8] sm:$0xff] %v467_v39  ;;  %v252_v40 = vpop.f32.mrb[4].mxu0  ;;  %v479_v41 = vsel %vm437_vm4, %v416_v34, %v458_v38  ;;  %v300_v42 = vpop.f32.mrb[4].mxu1 }
  0xfe   :  { %v405_v43 = vadd.f32 %v768_v20, %v252_v40  ;;  %500 = vst [vmem:[%s857_s3 + $0x68] sm:$0xff] %v479_v41  ;;  %v573_v44 = vpop.f32.mrb[5].mxu0  ;;  %v417_v45 = vadd.f32 %v768_v20, %v300_v42  ;;  %v597_v46 = vpop.f32.mrb[5].mxu1 }
  0xff   :  { %v255_v47 = vpop.f32.mrb[6].mxu0  ;;  %v303_v48 = vpop.f32.mrb[6].mxu1 }
 0x100   :  { %vm426_vm5 = vcmp.ge.f32.partialorder %v405_v43, 0.0  ;;  %v447_v49 = vmul.f32 0.2, %v405_v43  ;;  %v406_v50 = vadd.f32 %v768_v20, %v255_v47  ;;  %v574_v51 = vpop.f32.mrb[7].mxu0  ;;  %vm438_vm6 = vcmp.ge.f32.partialorder %v417_v45, 0.0  ;;  %v598_v52 = vpop.f32.mrb[7].mxu1 }
 0x101   :  { %v459_v53 = vmul.f32 0.2, %v417_v45  ;;  %v418_v54 = vadd.f32 %v768_v20, %v303_v48 }
 0x102   :  { %v468_v55 = vsel %vm426_vm5, %v405_v43, %v447_v49  ;;  %vm427_vm7 = vcmp.ge.f32.partialorder %v406_v50, 0.0  ;;  %v448_v56 = vmul.f32 0.2, %v406_v50 }
 0x103   :  { %489 = vst [vmem:[%s857_s3 + $0x10] sm:$0xff] %v468_v55  ;;  %v480_v57 = vsel %vm438_vm6, %v417_v45, %v459_v53  ;;  %vm439_vm8 = vcmp.ge.f32.partialorder %v418_v54, 0.0  ;;  %v460_v58 = vmul.f32 0.2, %v418_v54 }
 0x104   :  { %v469_v59 = vsel %vm427_vm7, %v406_v50, %v448_v56  ;;  %501 = vst [vmem:[%s857_s3 + $0x70] sm:$0xff] %v480_v57 }
 0x105   :  { %490 = vst [vmem:[%s857_s3 + $0x18] sm:$0xff] %v469_v59  ;;  %v260_v60 = vpop.f32.mrb[8].mxu0  ;;  %v481_v61 = vsel %vm439_vm8, %v418_v54, %v460_v58  ;;  %v308_v62 = vpop.f32.mrb[8].mxu1 }
 0x106   :  { %v407_v63 = vadd.f32 %v768_v20, %v260_v60  ;;  %502 = vst [vmem:[%s857_s3 + $0x78] sm:$0xff] %v481_v61  ;;  %v577_v0 = vpop.f32.mrb[9].mxu0  ;;  %v419_v1 = vadd.f32 %v768_v20, %v308_v62  ;;  %v601_v2 = vpop.f32.mrb[9].mxu1 }
 0x107   :  { %v263_v3 = vpop.f32.mrb[10].mxu0  ;;  %v311_v4 = vpop.f32.mrb[10].mxu1 }
 0x108   :  { %vm428_vm9 = vcmp.ge.f32.partialorder %v407_v63, 0.0  ;;  %v449_v5 = vmul.f32 0.2, %v407_v63  ;;  %v408_v6 = vadd.f32 %v768_v20, %v263_v3  ;;  %v578_v7 = vpop.f32.mrb[11].mxu0  ;;  %vm440_vm10 = vcmp.ge.f32.partialorder %v419_v1, 0.0  ;;  %v602_v8 = vpop.f32.mrb[11].mxu1 }
 0x109   :  { %v461_v9 = vmul.f32 0.2, %v419_v1  ;;  %v420_v10 = vadd.f32 %v768_v20, %v311_v4 }
 0x10a   :  { %v470_v11 = vsel %vm428_vm9, %v407_v63, %v449_v5  ;;  %vm429_vm11 = vcmp.ge.f32.partialorder %v408_v6, 0.0  ;;  %v450_v12 = vmul.f32 0.2, %v408_v6 }
 0x10b   :  { %491 = vst [vmem:[%s857_s3 + $0x20] sm:$0xff] %v470_v11  ;;  %v482_v13 = vsel %vm440_vm10, %v419_v1, %v461_v9  ;;  %vm441_vm12 = vcmp.ge.f32.partialorder %v420_v10, 0.0  ;;  %v462_v14 = vmul.f32 0.2, %v420_v10 }
 0x10c   :  { %v471_v15 = vsel %vm429_vm11, %v408_v6, %v450_v12  ;;  %503 = vst [vmem:[%s857_s3 + $0x80] sm:$0xff] %v482_v13 }
 0x10d   :  { %492 = vst [vmem:[%s857_s3 + $0x28] sm:$0xff] %v471_v15  ;;  %v268_v16 = vpop.f32.mrb[12].mxu0  ;;  %v483_v17 = vsel %vm441_vm12, %v420_v10, %v462_v14  ;;  %v316_v18 = vpop.f32.mrb[12].mxu1 }
 0x10e   :  { %v409_v19 = vadd.f32 %v768_v20, %v268_v16  ;;  %504 = vst [vmem:[%s857_s3 + $0x88] sm:$0xff] %v483_v17  ;;  %v581_v21 = vpop.f32.mrb[13].mxu0  ;;  %v421_v22 = vadd.f32 %v768_v20, %v316_v18  ;;  %v605_v23 = vpop.f32.mrb[13].mxu1 }
 0x10f   :  { %v271_v24 = vpop.f32.mrb[14].mxu0  ;;  %v319_v25 = vpop.f32.mrb[14].mxu1 }
 0x110   :  { %vm430_vm13 = vcmp.ge.f32.partialorder %v409_v19, 0.0  ;;  %v451_v26 = vmul.f32 0.2, %v409_v19  ;;  %v410_v27 = vadd.f32 %v768_v20, %v271_v24  ;;  %v582_v28 = vpop.f32.mrb[15].mxu0  ;;  %vm442_vm14 = vcmp.ge.f32.partialorder %v421_v22, 0.0  ;;  %v606_v29 = vpop.f32.mrb[15].mxu1 }
 0x111   :  { %v463_v30 = vmul.f32 0.2, %v421_v22  ;;  %v422_v31 = vadd.f32 %v768_v20, %v319_v25 }
 0x112   :  { %v472_v32 = vsel %vm430_vm13, %v409_v19, %v451_v26  ;;  %vm431_vm15 = vcmp.ge.f32.partialorder %v410_v27, 0.0  ;;  %v452_v33 = vmul.f32 0.2, %v410_v27 }
 0x113   :  { %493 = vst [vmem:[%s857_s3 + $0x30] sm:$0xff] %v472_v32  ;;  %v484_v34 = vsel %vm442_vm14, %v421_v22, %v463_v30  ;;  %vm443_vm0 = vcmp.ge.f32.partialorder %v422_v31, 0.0  ;;  %v464_v35 = vmul.f32 0.2, %v422_v31 }
 0x114   :  { %v473_v36 = vsel %vm431_vm15, %v410_v27, %v452_v33  ;;  %505 = vst [vmem:[%s857_s3 + $0x90] sm:$0xff] %v484_v34 }
 0x115   :  { %494 = vst [vmem:[%s857_s3 + $0x38] sm:$0xff] %v473_v36  ;;  %v276_v37 = vpop.f32.mrb[16].mxu0  ;;  %v485_v38 = vsel %vm443_vm0, %v422_v31, %v464_v35  ;;  %v324_v39 = vpop.f32.mrb[16].mxu1 }
 0x116   :  { %v411_v40 = vadd.f32 %v768_v20, %v276_v37  ;;  %506 = vst [vmem:[%s857_s3 + $0x98] sm:$0xff] %v485_v38  ;;  %v585_v41 = vpop.f32.mrb[17].mxu0  ;;  %v423_v42 = vadd.f32 %v768_v20, %v324_v39  ;;  %v609_v43 = vpop.f32.mrb[17].mxu1 }
 0x117   :  { %v279_v44 = vpop.f32.mrb[18].mxu0  ;;  %v327_v45 = vpop.f32.mrb[18].mxu1 }
 0x118   :  { %vm432_vm1 = vcmp.ge.f32.partialorder %v411_v40, 0.0  ;;  %v453_v46 = vmul.f32 0.2, %v411_v40  ;;  %v412_v47 = vadd.f32 %v768_v20, %v279_v44  ;;  %v586_v48 = vpop.f32.mrb[19].mxu0  ;;  %vm444_vm2 = vcmp.ge.f32.partialorder %v423_v42, 0.0  ;;  %v610_v49 = vpop.f32.mrb[19].mxu1 }
 0x119   :  { %v465_v50 = vmul.f32 0.2, %v423_v42 }
 0x11a   :  { %v474_v51 = vsel %vm432_vm1, %v411_v40, %v453_v46  ;;  %vm433_vm3 = vcmp.ge.f32.partialorder %v412_v47, 0.0  ;;  %v454_v52 = vmul.f32 0.2, %v412_v47 }
 0x11b   :  { %495 = vst [vmem:[%s857_s3 + $0x40] sm:$0xff] %v474_v51  ;;  %v486_v53 = vsel %vm444_vm2, %v423_v42, %v465_v50 }
 0x11c   :  { %v475_v54 = vsel %vm433_vm3, %v412_v47, %v454_v52  ;;  %507 = vst [vmem:[%s857_s3 + $0xa0] sm:$0xff] %v486_v53 }
 0x11d   :  { %496 = vst [vmem:[%s857_s3 + $0x48] sm:$0xff] %v475_v54  ;;  %v284_v55 = vpop.f32.mrb[20].mxu0 }
 0x11e   :  { %v413_v56 = vadd.f32 %v768_v20, %v284_v55  ;;  %v589_v57 = vpop.f32.mrb[21].mxu0 }
 0x11f   :  { %v287_v58 = vpop.f32.mrb[22].mxu0 }
 0x120   :  { %vm434_vm4 = vcmp.ge.f32.partialorder %v413_v56, 0.0  ;;  %v455_v59 = vmul.f32 0.2, %v413_v56  ;;  %v414_v60 = vadd.f32 %v768_v20, %v287_v58  ;;  %v590_v61 = vpop.f32.mrb[23].mxu0 }
 0x122   :  { %v476_v62 = vsel %vm434_vm4, %v413_v56, %v455_v59  ;;  %vm435_vm5 = vcmp.ge.f32.partialorder %v414_v60, 0.0  ;;  %v456_v63 = vmul.f32 0.2, %v414_v60 }
 0x123   :  { %497 = vst [vmem:[%s857_s3 + $0x50] sm:$0xff] %v476_v62 }
 0x124   :  { %v477_v0 = vsel %vm435_vm5, %v414_v60, %v456_v63 }
 0x125   :  { %498 = vst [vmem:[%s857_s3 + $0x58] sm:$0xff] %v477_v0 }

// kernel: discriminator_forward.13
= control target key start
LH: loop header
LB: loop body
LE: loop exit
PB: predicated region body
PF: predicated region fallthrough
CT: control target
= control target key end

     0   :  { %s387_s9 = smov 0   ;;  %s389_s10 = smov 0   ;;  %s445_s0 = inlined_call_operand.vmem [shape: f32[2,32,16], index: 0, kind: input, shape index: {}]   ;;  %s446_s1 = inlined_call_operand.vmem [shape: f32[2,1,16], index: 1, kind: output, shape index: {0}]   ;;  %s447_s2 = inlined_call_operand.vmem [shape: f32[2,1,16], index: 2, kind: output, shape index: {1}]  }
   0x1   :  { %s391_s11 = smov 0  }
   0x2 LB: > { %s25_s12 = sadd.s32 1, %s365_s10  ;;  %p316_p0 = scmp.ge.s32.totalorder %s369_s11, 1  ;;  %s369_s11 = sphi %s391_s11, %s13_s11   ;;  %s365_s10 = sphi %s389_s10, %s449_s10   ;;  %s361_s9 = sphi %s387_s9, %s448_s9  }
   0x3   : > { %p27_p1 = scmp.ge.s32.totalorder %s25_s12, 2  ;;  %p134_p2 = scmp.lt.s32.totalorder %s369_s11, 3 }
   0x5   : > { %s451_s12 = smov (%p27_p1, %s25_s12), 0  ;;  %p135_p3 = pnand %p316_p0, %p134_p2 }
   0x6   : > { %p162_p4 = scmp.lt.s32.totalorder (!%p135_p3), %s361_s9, 1  ;;  %vm181_vm0 = vcmask (!%p135_p3), 122880   ;;  %vm189_vm1 = vcmask (!%p135_p3), 130048   ;;  %v371_v0 = vmov (!%p135_p3), 0.0  }
   0x7   : > { %138 = sbr.rel (%p135_p3) target bundleno = 43 (0x2b), region = 24 }
   0xe   : > { %s453_s9 = smov (!%p162_p4, %s361_s9), 1 }
   0xf   : > { %s321_s13 = sshll.u32 %s453_s9, 5  ;;  %s408_s16 = scalar_lea.vmem %s446_s1, %s453_s9 }
  0x10   : > { %s169_s19 = scalar_lea.vmem %s445_s0, %s321_s13  ;;  %182 = vst.msk [vmem:[%s408_s16] sm:$0x1] %vm181_vm0, %v371_v0  ;;  %s418_s22 = scalar_lea.vmem %s447_s2, %s453_s9 }
  0x11   : > { %v184_v1 = vld [vmem:[%s169_s19] sm:$0xff]  ;;  %v185_v2 = vld [vmem:[%s169_s19 + $0x8] sm:$0xff]  ;;  %v186_v3 = vld [vmem:[%s169_s19 + $0x10] sm:$0xff]  ;;  %183 = vst.msk [vmem:[%s418_s22] sm:$0x1] %vm181_vm0, %v371_v0 }
  0x12   : > { %v187_v4 = vld [vmem:[%s169_s19 + $0x18] sm:$0xff]  ;;  %v190_v5 = vsel %vm189_vm1, %v184_v1, 0.0  ;;  %v191_v6 = vsel %vm189_vm1, %v185_v2, 0.0  ;;  %v193_v7 = vsel %vm189_vm1, %v186_v3, 0.0  ;;  %v207_v8 = vmul.f32 %v184_v1, %v184_v1 }
  0x13   : > { %v192_v9 = vadd.f32 %v191_v6, %v190_v5  ;;  %v208_v10 = vmul.f32 %v185_v2, %v185_v2  ;;  %v209_v11 = vmul.f32 %v186_v3, %v186_v3  ;;  %v195_v12 = vsel %vm189_vm1, %v187_v4, 0.0 }
  0x14   : > { %v210_v13 = vmul.f32 %v187_v4, %v187_v4  ;;  %v211_v14 = vsel %vm189_vm1, %v207_v8, 0.0 }
  0x15   : > { %v194_v15 = vadd.f32 %v193_v7, %v192_v9  ;;  %v212_v16 = vsel %vm189_vm1, %v208_v10, 0.0  ;;  %v214_v17 = vsel %vm189_vm1, %v209_v11, 0.0 }
  0x16   : > { %v213_v18 = vadd.f32 %v212_v16, %v211_v14  ;;  %v216_v20 = vsel %vm189_vm1, %v210_v13, 0.0 }
  0x17   : > { %v196_v19 = vadd.f32 %v195_v12, %v194_v15  ;;  %v188_v31 = vld [vmem:[%s408_s16] sm:$0x1] }
  0x18   : > { %v215_v21 = vadd.f32 %v214_v17, %v213_v18  ;;  %v206_v36 = vld [vmem:[%s418_s22] sm:$0x1] }
  0x19   : > { %v197_v22 = vrot.slane %v196_v19, 4 }
  0x1a   : > { %v217_v23 = vadd.f32 %v216_v20, %v215_v21 }
  0x1b   : > { %v198_v24 = vadd.f32 %v197_v22, %v196_v19 }
  0x1c   : > { %v218_v25 = vrot.slane %v217_v23, 4 }
  0x1d   : > { %v199_v26 = vrot.slane %v198_v24, 2 }
  0x1e   : > { %v219_v27 = vadd.f32 %v218_v25, %v217_v23 }
  0x1f   : > { %v200_v28 = vadd.f32 %v199_v26, %v198_v24 }
  0x20   : > { %v220_v29 = vrot.slane %v219_v27, 2 }
  0x21   : > { %v201_v30 = vrot.slane %v200_v28, 1 }
  0x22   : > { %v221_v32 = vadd.f32 %v220_v29, %v219_v27 }
  0x23   : > { %v202_v33 = vadd.f32 %v201_v30, %v200_v28 }
  0x24   : > { %v222_v34 = vrot.slane %v221_v32, 1 }
  0x25   : > { %v203_v35 = vadd.f32 %v202_v33, %v188_v31 }
  0x26   : > { %v223_v37 = vadd.f32 %v222_v34, %v221_v32 }
  0x27   : > { %205 = vst.msk [vmem:[%s408_s16] sm:$0x1] %vm181_vm0, %v203_v35 }
  0x28   : > { %v224_v38 = vadd.f32 %v223_v37, %v206_v36 }
  0x2a   : > { %225 = vst.msk [vmem:[%s418_s22] sm:$0x1] %vm181_vm0, %v224_v38 }
  0x2b PF: > { %s13_s11 = sadd.s32 1, %s369_s11   ;;  %s448_s9 = smov %s365_s10 }
  0x2c   : > { %p10_p5 = scmp.ge.s32.totalorder %s13_s11, 4   ;;  %s449_s10 = smov %s451_s12 }
  0x2e   :  { %12 = sbr.rel (!%p10_p5) target bundleno = 2 (0x2), region = 70 }

// kernel: discriminator_forward.12
= control target key start
LH: loop header
LB: loop body
LE: loop exit
PB: predicated region body
PF: predicated region fallthrough
CT: control target
= control target key end

     0   :  { %s396_s1 = inlined_call_operand.vmem [shape: bf16[128,128], index: 1, kind: input, shape index: {}]   ;;  %s397_s0 = inlined_call_operand.vmem [shape: bf16[56,128], index: 0, kind: input, shape index: {}]   ;;  %s398_s2 = inlined_call_operand.vmem [shape: f32[1,128], index: 2, kind: input, shape index: {}]   ;;  %s399_s3 = inlined_call_operand.vmem [shape: f32[56,128], index: 3, kind: output, shape index: {}]  }
   0x1   :  { %v304_v0 = vld [vmem:[%s396_s1] sm:$0xff]   ;;  %v305_v1 = vld [vmem:[%s396_s1 + $0x8] sm:$0xff]   ;;  %v306_v2 = vld [vmem:[%s396_s1 + $0x10] sm:$0xff]  }
   0x2   :  { %264 = vmatprep.subr.bf16.mxu0 %v304_v0  ;;  %288 = vmatprep.subr.bf16.mxu1 %v304_v0  ;;  %v307_v3 = vld [vmem:[%s396_s1 + $0x18] sm:$0xff]   ;;  %v312_v4 = vld [vmem:[%s397_s0] sm:$0xff]   ;;  %v313_v5 = vld [vmem:[%s397_s0 + $0x10] sm:$0xff]  }
   0x3   :  { %265 = vmatpush3.bf16.msra.mxu0 %v304_v0  ;;  %296 = vmatpush3.bf16.msra.mxu1 %v304_v0  ;;  %v308_v6 = vld [vmem:[%s396_s1 + $0x20] sm:$0xff]   ;;  %v309_v7 = vld [vmem:[%s396_s1 + $0x28] sm:$0xff]   ;;  %v310_v8 = vld [vmem:[%s396_s1 + $0x30] sm:$0xff]  }
   0x4   :  { %266 = vmatprep.subr.bf16.mxu0 %v305_v1  ;;  %289 = vmatprep.subr.bf16.mxu1 %v305_v1  ;;  %v311_v9 = vld [vmem:[%s396_s1 + $0x38] sm:$0xff]   ;;  %v314_v10 = vld [vmem:[%s397_s0 + $0x8] sm:$0xff]   ;;  %v251_v12 = vld [vmem:[%s398_s2] ss:$0 sm:$0xff] }
   0x5   :  { %280 = vmatprep.mubr.bf16.mxu0 %v312_v4  ;;  %284 = vmatprep.mubr.bf16.mxu1 %v313_v5  ;;  %v315_v11 = vld [vmem:[%s397_s0 + $0x18] ss:$0 sps:$4 sm:$0xff]  }
   0x7   :  { %267 = vmatpush3.bf16.msra.mxu0 %v305_v1  ;;  %297 = vmatpush3.bf16.msra.mxu1 %v305_v1 }
   0x8   :  { %268 = vmatprep.subr.bf16.mxu0 %v306_v2  ;;  %290 = vmatprep.subr.bf16.mxu1 %v306_v2 }
   0xb   :  { %269 = vmatpush3.bf16.msra.mxu0 %v306_v2  ;;  %298 = vmatpush3.bf16.msra.mxu1 %v306_v2 }
   0xc   :  { %270 = vmatprep.subr.bf16.mxu0 %v307_v3  ;;  %291 = vmatprep.subr.bf16.mxu1 %v307_v3 }
   0xf   :  { %271 = vmatpush3.bf16.msra.mxu0 %v307_v3  ;;  %299 = vmatpush3.bf16.msra.mxu1 %v307_v3 }
  0x10   :  { %272 = vmatprep.subr.bf16.mxu0 %v308_v6  ;;  %292 = vmatprep.subr.bf16.mxu1 %v308_v6 }
  0x13   :  { %273 = vmatpush3.bf16.msra.mxu0 %v308_v6  ;;  %300 = vmatpush3.bf16.msra.mxu1 %v308_v6 }
  0x14   :  { %274 = vmatprep.subr.bf16.mxu0 %v309_v7  ;;  %293 = vmatprep.subr.bf16.mxu1 %v309_v7 }
  0x17   :  { %275 = vmatpush3.bf16.msra.mxu0 %v309_v7  ;;  %301 = vmatpush3.bf16.msra.mxu1 %v309_v7 }
  0x18   :  { %276 = vmatprep.subr.bf16.mxu0 %v310_v8  ;;  %294 = vmatprep.subr.bf16.mxu1 %v310_v8 }
  0x1b   :  { %277 = vmatpush3.bf16.msra.mxu0 %v310_v8  ;;  %302 = vmatpush3.bf16.msra.mxu1 %v310_v8 }
  0x1c   :  { %278 = vmatprep.subr.bf16.mxu0 %v311_v9  ;;  %295 = vmatprep.subr.bf16.mxu1 %v311_v9 }
  0x1f   :  { %279 = vmatpush3.bf16.msra.mxu0 %v311_v9  ;;  %303 = vmatpush3.bf16.msra.mxu1 %v311_v9 }
  0x22   :  { %281 = vmatmul.mubr.bf16.vlgmr.msra.gmra.mrb[0].mxu0 %v314_v10  ;;  %285 = vmatmul.mubr.bf16.vlgmr.msra.gmra.mrb[0].mxu1 %v315_v11 }
  0xf5   :  { %v282_v13 = vpop.f32.mrb[0].mxu0  ;;  %v286_v14 = vpop.f32.mrb[0].mxu1 }
  0xf6   :  { %v223_v15 = vadd.f32 %v282_v13, %v251_v12  ;;  %v227_v16 = vadd.f32 %v286_v14, %v251_v12  ;;  %v160_v17 = vpop.f32.mrb[1].mxu0  ;;  %v176_v18 = vpop.f32.mrb[1].mxu1 }
  0xf7   :  { %v221_v19 = vadd.f32 %v251_v12, %v160_v17  ;;  %v225_v20 = vadd.f32 %v251_v12, %v176_v18  ;;  %v283_v21 = vpop.f32.mrb[2].mxu0  ;;  %v287_v22 = vpop.f32.mrb[2].mxu1 }
  0xf8   :  { %230 = vst [vmem:[%s399_s3 + $0x10] sm:$0xff] %v223_v15  ;;  %234 = vst [vmem:[%s399_s3 + $0x30] sm:$0xff] %v227_v16  ;;  %v224_v23 = vadd.f32 %v283_v21, %v251_v12  ;;  %v163_v24 = vpop.f32.mrb[3].mxu0  ;;  %v179_v25 = vpop.f32.mrb[3].mxu1 }
  0xf9   :  { %228 = vst [vmem:[%s399_s3] sm:$0xff] %v221_v19  ;;  %232 = vst [vmem:[%s399_s3 + $0x20] sm:$0xff] %v225_v20  ;;  %v222_v26 = vadd.f32 %v251_v12, %v163_v24  ;;  %v226_v27 = vadd.f32 %v251_v12, %v179_v25 }
  0xfa   :  { %231 = vst [vmem:[%s399_s3 + $0x18] sm:$0xff] %v224_v23 }
  0xfb   :  { %229 = vst [vmem:[%s399_s3 + $0x8] sm:$0xff] %v222_v26  ;;  %233 = vst [vmem:[%s399_s3 + $0x28] sm:$0xff] %v226_v27 }

// kernel: discriminator_forward.14
= control target key start
LH: loop header
LB: loop body
LE: loop exit
PB: predicated region body
PF: predicated region fallthrough
CT: control target
= control target key end

     0   :  { %s476_s12 = smov 0   ;;  %s478_s13 = smov 0   ;;  %s524_s0 = inlined_call_operand.vmem [shape: f32[2,32,16], index: 0, kind: input, shape index: {}]   ;;  %s525_s1 = inlined_call_operand.vmem [shape: f32[2,1,16], index: 1, kind: input, shape index: {}]   ;;  %s526_s2 = inlined_call_operand.vmem [shape: f32[2,1,16], index: 2, kind: input, shape index: {}]   ;;  %s527_s3 = inlined_call_operand.vmem [shape: f32[2,32,16], index: 3, kind: output, shape index: {}]  }
   0x1   :  { %s480_s14 = smov 0  }
   0x2 LB: > { %s25_s15 = sadd.s32 1, %s450_s13  ;;  %p397_p0 = scmp.ge.s32.totalorder %s454_s14, 1  ;;  %s454_s14 = sphi %s480_s14, %s13_s14   ;;  %s450_s13 = sphi %s478_s13, %s529_s13   ;;  %s446_s12 = sphi %s476_s12, %s528_s12  }
   0x3   : > { %p27_p1 = scmp.ge.s32.totalorder %s25_s15, 2  ;;  %p174_p2 = scmp.lt.s32.totalorder %s454_s14, 3 }
   0x5   : > { %s531_s15 = smov (%p27_p1, %s25_s15), 0  ;;  %p175_p3 = pnand %p397_p0, %p174_p2 }
   0x6   : > { %p213_p4 = scmp.lt.s32.totalorder (!%p175_p3), %s446_s12, 1  ;;  %v250_v5 = vlaneseq (!%p175_p3)  ;;  %vm283_vm0 = vcmask (!%p175_p3), 130048  }
   0x7   : > { %178 = sbr.rel (%p175_p3) target bundleno = 47 (0x2f), region = 32 }
   0x8   : > { %v251_v8 = vshrl.u32 (!%p175_p3), %v250_v5, 7 }
   0xa   : > { %v252_v10 = vsub.s32 (!%p175_p3), 0, %v251_v8 }
   0xe   : > { %s533_s12 = smov (!%p213_p4, %s446_s12), 1 }
   0xf   : > { %s224_s18 = scalar_lea.vmem %s525_s1, %s533_s12  ;;  %s227_s21 = scalar_lea.vmem %s526_s2, %s533_s12 }
  0x10   : > { %v242_v0 = vld [vmem:[%s224_s18] sm:$0x1]  ;;  %s404_s22 = sshll.u32 %s533_s12, 5 }
  0x11   : > { %v243_v1 = vmul.f32 0.04, %v242_v0  ;;  %v244_v2 = vld [vmem:[%s227_s21] sm:$0x1]  ;;  %s220_s25 = scalar_lea.vmem %s524_s0, %s404_s22  ;;  %s236_s28 = scalar_lea.vmem %s527_s3, %s404_s22 }
  0x12   : > { %v245_v3 = vmul.f32 0.04, %v244_v2  ;;  %v238_v11 = vld [vmem:[%s220_s25] sm:$0xff]  ;;  %v239_v13 = vld [vmem:[%s220_s25 + $0x8] sm:$0xff]  ;;  %v240_v14 = vld [vmem:[%s220_s25 + $0x10] sm:$0xff] }
  0x13   : > { %v246_v4 = vmul.f32 %v243_v1, %v243_v1  ;;  %v253_v12 = vrot.slane %v243_v1, %v252_v10  ;;  %v241_v15 = vld [vmem:[%s220_s25 + $0x18] sm:$0xff] }
  0x15   : > { %v247_v6 = vsub.f32 %v245_v3, %v246_v4  ;;  %v255_v16 = vsub.f32 %v238_v11, %v253_v12  ;;  %v256_v17 = vsub.f32 %v239_v13, %v253_v12  ;;  %v257_v18 = vsub.f32 %v240_v14, %v253_v12 }
  0x16   : > { %v258_v19 = vsub.f32 %v241_v15, %v253_v12 }
  0x17   : > { %v248_v7 = vmax.f32 %v247_v6, 0.0 }
  0x19   : > { %v259_v9 = vadd.f32 1e-05, %v248_v7 }
  0x1b   : > { %430 = vrsqrt.f32 %v259_v9 }
  0x25   : > { %v431_v20 = vpop.eup %430 }
  0x26   : > { %v265_v21 = vrot.slane %v431_v20, %v252_v10 }
  0x28   : > { %v267_v22 = vmul.f32 %v265_v21, %v255_v16  ;;  %v268_v23 = vmul.f32 %v265_v21, %v256_v17  ;;  %v269_v24 = vmul.f32 %v265_v21, %v257_v18  ;;  %v270_v25 = vmul.f32 %v265_v21, %v258_v19 }
  0x2a   : > { %vm271_vm1 = vcmp.ge.f32.partialorder %v267_v22, 0.0  ;;  %v275_v26 = vmul.f32 0.2, %v267_v22  ;;  %vm272_vm2 = vcmp.ge.f32.partialorder %v268_v23, 0.0  ;;  %v276_v27 = vmul.f32 0.2, %v268_v23 }
  0x2b   : > { %vm273_vm3 = vcmp.ge.f32.partialorder %v269_v24, 0.0  ;;  %v277_v28 = vmul.f32 0.2, %v269_v24  ;;  %vm274_vm4 = vcmp.ge.f32.partialorder %v270_v25, 0.0  ;;  %v278_v29 = vmul.f32 0.2, %v270_v25 }
  0x2c   : > { %v279_v30 = vsel %vm271_vm1, %v267_v22, %v275_v26  ;;  %v280_v31 = vsel %vm272_vm2, %v268_v23, %v276_v27 }
  0x2d   : > { %284 = vst.msk [vmem:[%s236_s28] sm:$0xff] %vm283_vm0, %v279_v30  ;;  %285 = vst.msk [vmem:[%s236_s28 + $0x8] sm:$0xff] %vm283_vm0, %v280_v31  ;;  %v281_v32 = vsel %vm273_vm3, %v269_v24, %v277_v28  ;;  %v282_v33 = vsel %vm274_vm4, %v270_v25, %v278_v29 }
  0x2e   : > { %286 = vst.msk [vmem:[%s236_s28 + $0x10] sm:$0xff] %vm283_vm0, %v281_v32  ;;  %287 = vst.msk [vmem:[%s236_s28 + $0x18] sm:$0xff] %vm283_vm0, %v282_v33 }
  0x2f PF: > { %s13_s14 = sadd.s32 1, %s454_s14   ;;  %s528_s12 = smov %s450_s13 }
  0x30   : > { %p10_p5 = scmp.ge.s32.totalorder %s13_s14, 4   ;;  %s529_s13 = smov %s531_s15 }
  0x32   :  { %12 = sbr.rel (!%p10_p5) target bundleno = 2 (0x2), region = 68 }

// kernel: discriminator_forward.16
= control target key start
LH: loop header
LB: loop body
LE: loop exit
PB: predicated region body
PF: predicated region fallthrough
CT: control target
= control target key end

     0   :  { %s375_s9 = smov 0   ;;  %s377_s10 = smov 0   ;;  %s420_s0 = inlined_call_operand.vmem [shape: f32[2,16,32], index: 0, kind: input, shape index: {}]   ;;  %s421_s1 = inlined_call_operand.vmem [shape: f32[2,1,32], index: 1, kind: output, shape index: {0}]   ;;  %s422_s2 = inlined_call_operand.vmem [shape: f32[2,1,32], index: 2, kind: output, shape index: {1}]  }
   0x1   :  { %s379_s11 = smov 0  }
   0x2 LB: > { %s25_s12 = sadd.s32 1, %s353_s10  ;;  %p304_p0 = scmp.ge.s32.totalorder %s357_s11, 1  ;;  %s357_s11 = sphi %s379_s11, %s13_s11   ;;  %s353_s10 = sphi %s377_s10, %s424_s10   ;;  %s349_s9 = sphi %s375_s9, %s423_s9  }
   0x3   : > { %p27_p1 = scmp.ge.s32.totalorder %s25_s12, 2  ;;  %p134_p2 = scmp.lt.s32.totalorder %s357_s11, 3 }
   0x5   : > { %s426_s12 = smov (%p27_p1, %s25_s12), 0  ;;  %p135_p3 = pnand %p304_p0, %p134_p2 }
   0x6   : > { %p162_p4 = scmp.lt.s32.totalorder (!%p135_p3), %s349_s9, 1  ;;  %vm181_vm0 = vcmask (!%p135_p3), 253952   ;;  %vm187_vm1 = vcmask (!%p135_p3), 261120   ;;  %v359_v0 = vmov (!%p135_p3), 0.0  }
   0x7   : > { %138 = sbr.rel (%p135_p3) target bundleno = 38 (0x26), region = 24 }
   0xe   : > { %s428_s9 = smov (!%p162_p4, %s349_s9), 1 }
   0xf   : > { %s309_s13 = sshll.u32 %s428_s9, 4  ;;  %s396_s16 = scalar_lea.vmem %s421_s1, %s428_s9 }
  0x10   : > { %s169_s19 = scalar_lea.vmem %s420_s0, %s309_s13  ;;  %182 = vst.msk [vmem:[%s396_s16] sm:$0x1] %vm181_vm0, %v359_v0  ;;  %s176_s22 = scalar_lea.vmem %s422_s2, %s428_s9 }
  0x11   : > { %v184_v1 = vld [vmem:[%s169_s19] sm:$0xff]  ;;  %v185_v2 = vld [vmem:[%s169_s19 + $0x8] sm:$0xff]  ;;  %183 = vst.msk [vmem:[%s176_s22] sm:$0x1] %vm181_vm0, %v359_v0 }
  0x12   : > { %v188_v3 = vsel %vm187_vm1, %v184_v1, 0.0  ;;  %v189_v4 = vsel %vm187_vm1, %v185_v2, 0.0  ;;  %v201_v5 = vmul.f32 %v184_v1, %v184_v1  ;;  %v202_v6 = vmul.f32 %v185_v2, %v185_v2 }
  0x13   : > { %v190_v7 = vadd.f32 %v189_v4, %v188_v3 }
  0x14   : > { %v203_v8 = vsel %vm187_vm1, %v201_v5, 0.0  ;;  %v204_v9 = vsel %vm187_vm1, %v202_v6, 0.0 }
  0x15   : > { %v191_v10 = vrot.slane %v190_v7, 4  ;;  %v205_v11 = vadd.f32 %v204_v9, %v203_v8 }
  0x17   : > { %v192_v12 = vadd.f32 %v191_v10, %v190_v7  ;;  %v206_v13 = vrot.slane %v205_v11, 4  ;;  %v186_v20 = vld [vmem:[%s396_s16] sm:$0x1] }
  0x18   : > { %v200_v23 = vld [vmem:[%s176_s22] sm:$0x1] }
  0x19   : > { %v193_v14 = vrot.slane %v192_v12, 2  ;;  %v207_v15 = vadd.f32 %v206_v13, %v205_v11 }
  0x1b   : > { %v194_v16 = vadd.f32 %v193_v14, %v192_v12  ;;  %v208_v17 = vrot.slane %v207_v15, 2 }
  0x1d   : > { %v195_v18 = vrot.slane %v194_v16, 1  ;;  %v209_v19 = vadd.f32 %v208_v17, %v207_v15 }
  0x1f   : > { %v196_v21 = vadd.f32 %v195_v18, %v194_v16  ;;  %v210_v22 = vrot.slane %v209_v19, 1 }
  0x21   : > { %v197_v24 = vadd.f32 %v196_v21, %v186_v20  ;;  %v211_v25 = vadd.f32 %v210_v22, %v209_v19 }
  0x23   : > { %199 = vst.msk [vmem:[%s396_s16] sm:$0x1] %vm181_vm0, %v197_v24  ;;  %v212_v26 = vadd.f32 %v211_v25, %v200_v23 }
  0x25   : > { %213 = vst.msk [vmem:[%s176_s22] sm:$0x1] %vm181_vm0, %v212_v26 }
  0x26 PF: > { %s13_s11 = sadd.s32 1, %s357_s11   ;;  %s423_s9 = smov %s353_s10 }
  0x27   : > { %p10_p5 = scmp.ge.s32.totalorder %s13_s11, 4   ;;  %s424_s10 = smov %s426_s12 }
  0x29   :  { %12 = sbr.rel (!%p10_p5) target bundleno = 2 (0x2), region = 70 }

// kernel: discriminator_forward.15
= control target key start
LH: loop header
LB: loop body
LE: loop exit
PB: predicated region body
PF: predicated region fallthrough
CT: control target
= control target key end

     0   :  { %s425_s1 = inlined_call_operand.vmem [shape: bf16[256,128], index: 1, kind: input, shape index: {}]   ;;  %s426_s0 = inlined_call_operand.vmem [shape: bf16[24,256], index: 0, kind: input, shape index: {}]   ;;  %s427_s2 = inlined_call_operand.vmem [shape: f32[1,128], index: 2, kind: input, shape index: {}]   ;;  %s428_s3 = inlined_call_operand.vmem [shape: f32[24,128], index: 3, kind: output, shape index: {}]  }
   0x1   :  { %v315_v0 = vld [vmem:[%s425_s1 + $0x40] sm:$0xff]   ;;  %v317_v2 = vld [vmem:[%s425_s1 + $0x48] sm:$0xff]   ;;  %v319_v4 = vld [vmem:[%s425_s1 + $0x50] sm:$0xff]  }
   0x2   :  { %v316_v1 = vld [vmem:[%s425_s1] sm:$0xff]   ;;  %271 = vmatprep.subr.bf16.mxu0 %v315_v0  ;;  %299 = vmatprep.subr.bf16.mxu1 %v315_v0  ;;  %v318_v3 = vld [vmem:[%s425_s1 + $0x8] sm:$0xff]   ;;  %v320_v5 = vld [vmem:[%s425_s1 + $0x10] sm:$0xff]  }
   0x3   :  { %272 = vmatpush3.bf16.msra.mxu0 %v316_v1  ;;  %307 = vmatpush3.bf16.msra.mxu1 %v316_v1  ;;  %v321_v6 = vld [vmem:[%s425_s1 + $0x58] sm:$0xff]   ;;  %v323_v8 = vld [vmem:[%s425_s1 + $0x60] sm:$0xff]   ;;  %v325_v10 = vld [vmem:[%s425_s1 + $0x68] sm:$0xff]  }
   0x4   :  { %273 = vmatprep.subr.bf16.mxu0 %v317_v2  ;;  %300 = vmatprep.subr.bf16.mxu1 %v317_v2  ;;  %v322_v7 = vld [vmem:[%s425_s1 + $0x18] sm:$0xff]   ;;  %v324_v9 = vld [vmem:[%s425_s1 + $0x20] sm:$0xff]   ;;  %v27_v12 = vld [vmem:[%s426_s0 + $0x10] sm:$0xff] }
   0x5   :  { %v333_v11 = vld [vmem:[%s426_s0 + $0x4] ss:$8 sps:$4 sm:$0xff]   ;;  %v253_v13 = vcombine.high %v27_v12, %v27_v12  ;;  %v327_v15 = vld [vmem:[%s425_s1 + $0x70] sm:$0xff]   ;;  %v329_v17 = vld [vmem:[%s425_s1 + $0x78] sm:$0xff]   ;;  %v252_v20 = vcombine.low %v27_v12, %v27_v12 }
   0x6   :  { %v326_v14 = vld [vmem:[%s425_s1 + $0x28] sm:$0xff]   ;;  %205 = vmatprep.mubr.bf16.mxu0 %v333_v11  ;;  %v328_v16 = vld [vmem:[%s425_s1 + $0x30] sm:$0xff]   ;;  %v330_v18 = vld [vmem:[%s425_s1 + $0x38] sm:$0xff]  }
   0x7   :  { %274 = vmatpush3.bf16.msra.mxu0 %v318_v3  ;;  %308 = vmatpush3.bf16.msra.mxu1 %v318_v3  ;;  %v331_v19 = vld [vmem:[%s426_s0] ss:$8 sps:$4 sm:$0xff]  }
   0x8   :  { %275 = vmatprep.subr.bf16.mxu0 %v319_v4  ;;  %301 = vmatprep.subr.bf16.mxu1 %v319_v4  ;;  %v270_v24 = vld [vmem:[%s427_s2] ss:$0 sm:$0xff] }
   0x9   :  { %213 = vmatprep.mubr.bf16.mxu1 %v253_v13 }
   0xb   :  { %276 = vmatpush3.bf16.msra.mxu0 %v320_v5  ;;  %309 = vmatpush3.bf16.msra.mxu1 %v320_v5 }
   0xc   :  { %277 = vmatprep.subr.bf16.mxu0 %v321_v6  ;;  %302 = vmatprep.subr.bf16.mxu1 %v321_v6 }
   0xf   :  { %278 = vmatpush3.bf16.msra.mxu0 %v322_v7  ;;  %310 = vmatpush3.bf16.msra.mxu1 %v322_v7 }
  0x10   :  { %279 = vmatprep.subr.bf16.mxu0 %v323_v8  ;;  %303 = vmatprep.subr.bf16.mxu1 %v323_v8 }
  0x13   :  { %280 = vmatpush3.bf16.msra.mxu0 %v324_v9  ;;  %311 = vmatpush3.bf16.msra.mxu1 %v324_v9 }
  0x14   :  { %281 = vmatprep.subr.bf16.mxu0 %v325_v10  ;;  %304 = vmatprep.subr.bf16.mxu1 %v325_v10 }
  0x17   :  { %282 = vmatpush3.bf16.msra.mxu0 %v326_v14  ;;  %312 = vmatpush3.bf16.msra.mxu1 %v326_v14 }
  0x18   :  { %283 = vmatprep.subr.bf16.mxu0 %v327_v15  ;;  %305 = vmatprep.subr.bf16.mxu1 %v327_v15 }
  0x1b   :  { %284 = vmatpush3.bf16.msra.mxu0 %v328_v16  ;;  %313 = vmatpush3.bf16.msra.mxu1 %v328_v16 }
  0x1c   :  { %285 = vmatprep.subr.bf16.mxu0 %v329_v17  ;;  %306 = vmatprep.subr.bf16.mxu1 %v329_v17 }
  0x1f   :  { %286 = vmatpush3.bf16.msra.mxu0 %v330_v18  ;;  %314 = vmatpush3.bf16.msra.mxu1 %v330_v18 }
  0x22   :  { %206 = vmatmul.mubr.bf16.vlgmr.msra.gmra.mrb[0].mxu0 %v331_v19  ;;  %214 = vmatmul.mubr.bf16.vlgmr.msra.gmra.mrb[0].mxu1 %v252_v20 }
  0xf5   :  { %v287_v21 = vpop.f32.mrb[0].mxu0  ;;  %v293_v22 = vpop.f32.mrb[0].mxu1 }
  0xf6   :  { %v288_v23 = vpop.f32.mrb[1].mxu0  ;;  %v294_v25 = vpop.f32.mrb[1].mxu1 }
  0xf7   :  { %v289_v26 = vadd.f32 %v288_v23, %v287_v21  ;;  %v295_v27 = vadd.f32 %v294_v25, %v293_v22  ;;  %v290_v28 = vpop.f32.mrb[2].mxu0  ;;  %v296_v29 = vpop.f32.mrb[2].mxu1 }
  0xf8   :  { %v291_v30 = vpop.f32.mrb[3].mxu0  ;;  %v297_v31 = vpop.f32.mrb[3].mxu1 }
  0xf9   :  { %v240_v32 = vadd.f32 %v289_v26, %v270_v24  ;;  %v242_v33 = vadd.f32 %v295_v27, %v270_v24  ;;  %v292_v34 = vadd.f32 %v291_v30, %v290_v28 }
  0xfb   :  { %243 = vst [vmem:[%s428_s3] sm:$0xff] %v240_v32  ;;  %245 = vst [vmem:[%s428_s3 + $0x10] sm:$0xff] %v242_v33  ;;  %v241_v35 = vadd.f32 %v292_v34, %v270_v24 }
  0xfd   :  { %244 = vst [vmem:[%s428_s3 + $0x8] sm:$0xff] %v241_v35 }

// kernel: discriminator_forward.17
= control target key start
LH: loop header
LB: loop body
LE: loop exit
PB: predicated region body
PF: predicated region fallthrough
CT: control target
= control target key end

     0   :  { %s462_s12 = smov 0   ;;  %s464_s13 = smov 0   ;;  %s501_s0 = inlined_call_operand.vmem [shape: f32[2,16,32], index: 0, kind: input, shape index: {}]   ;;  %s502_s1 = inlined_call_operand.vmem [shape: f32[2,1,32], index: 1, kind: input, shape index: {}]   ;;  %s503_s2 = inlined_call_operand.vmem [shape: f32[2,1,32], index: 2, kind: input, shape index: {}]   ;;  %s504_s3 = inlined_call_operand.vmem [shape: f32[2,16,32], index: 3, kind: output, shape index: {}]  }
   0x1   :  { %s466_s14 = smov 0  }
   0x2 LB: > { %s25_s15 = sadd.s32 1, %s436_s13  ;;  %p383_p0 = scmp.ge.s32.totalorder %s440_s14, 1  ;;  %s440_s14 = sphi %s466_s14, %s13_s14   ;;  %s436_s13 = sphi %s464_s13, %s506_s13   ;;  %s432_s12 = sphi %s462_s12, %s505_s12  }
   0x3   : > { %p27_p1 = scmp.ge.s32.totalorder %s25_s15, 2  ;;  %p174_p2 = scmp.lt.s32.totalorder %s440_s14, 3 }
   0x5   : > { %s508_s15 = smov (%p27_p1, %s25_s15), 0  ;;  %p175_p3 = pnand %p383_p0, %p174_p2 }
   0x6   : > { %p213_p4 = scmp.lt.s32.totalorder (!%p175_p3), %s432_s12, 1  ;;  %v248_v5 = vlaneseq (!%p175_p3)  ;;  %vm271_vm0 = vcmask (!%p175_p3), 261120  }
   0x7   : > { %178 = sbr.rel (%p175_p3) target bundleno = 46 (0x2e), region = 32 }
   0x8   : > { %v249_v8 = vshrl.u32 (!%p175_p3), %v248_v5, 7 }
   0xa   : > { %v250_v10 = vsub.s32 (!%p175_p3), 0, %v249_v8 }
   0xe   : > { %s510_s12 = smov (!%p213_p4, %s432_s12), 1 }
   0xf   : > { %s224_s18 = scalar_lea.vmem %s502_s1, %s510_s12  ;;  %s227_s21 = scalar_lea.vmem %s503_s2, %s510_s12 }
  0x10   : > { %v240_v0 = vld [vmem:[%s224_s18] sm:$0x1]  ;;  %s390_s22 = sshll.u32 %s510_s12, 4 }
  0x11   : > { %v241_v1 = vmul.f32 0.11111111, %v240_v0  ;;  %v242_v2 = vld [vmem:[%s227_s21] sm:$0x1]  ;;  %s220_s25 = scalar_lea.vmem %s501_s0, %s390_s22  ;;  %s236_s28 = scalar_lea.vmem %s504_s3, %s390_s22 }
  0x12   : > { %v243_v3 = vmul.f32 0.11111111, %v242_v2  ;;  %v238_v12 = vld [vmem:[%s220_s25] sm:$0xff]  ;;  %v239_v13 = vld [vmem:[%s220_s25 + $0x8] sm:$0xff] }
  0x13   : > { %v244_v4 = vmul.f32 %v241_v1, %v241_v1  ;;  %v251_v11 = vrot.slane %v241_v1, %v250_v10 }
  0x15   : > { %v245_v6 = vsub.f32 %v243_v3, %v244_v4  ;;  %v253_v14 = vsub.f32 %v238_v12, %v251_v11  ;;  %v254_v15 = vsub.f32 %v239_v13, %v251_v11 }
  0x17   : > { %v246_v7 = vmax.f32 %v245_v6, 0.0 }
  0x19   : > { %v255_v9 = vadd.f32 1e-05, %v246_v7 }
  0x1b   : > { %416 = vrsqrt.f32 %v255_v9 }
  0x25   : > { %v417_v16 = vpop.eup %416 }
  0x26   : > { %v261_v17 = vrot.slane %v417_v16, %v250_v10 }
  0x28   : > { %v263_v18 = vmul.f32 %v261_v17, %v253_v14  ;;  %v264_v19 = vmul.f32 %v261_v17, %v254_v15 }
  0x2a   : > { %vm265_vm1 = vcmp.ge.f32.partialorder %v263_v18, 0.0  ;;  %v267_v20 = vmul.f32 0.2, %v263_v18  ;;  %vm266_vm2 = vcmp.ge.f32.partialorder %v264_v19, 0.0  ;;  %v268_v21 = vmul.f32 0.2, %v264_v19 }
  0x2c   : > { %v269_v22 = vsel %vm265_vm1, %v263_v18, %v267_v20  ;;  %v270_v23 = vsel %vm266_vm2, %v264_v19, %v268_v21 }
  0x2d   : > { %272 = vst.msk [vmem:[%s236_s28] sm:$0xff] %vm271_vm0, %v269_v22  ;;  %273 = vst.msk [vmem:[%s236_s28 + $0x8] sm:$0xff] %vm271_vm0, %v270_v23 }
  0x2e PF: > { %s13_s14 = sadd.s32 1, %s440_s14   ;;  %s505_s12 = smov %s436_s13 }
  0x2f   : > { %p10_p5 = scmp.ge.s32.totalorder %s13_s14, 4   ;;  %s506_s13 = smov %s508_s15 }
  0x31   :  { %12 = sbr.rel (!%p10_p5) target bundleno = 2 (0x2), region = 68 }

// kernel: discriminator_forward.18
= control target key start
LH: loop header
LB: loop body
LE: loop exit
PB: predicated region body
PF: predicated region fallthrough
CT: control target
= control target key end

     0   :  { %s759_s1 = inlined_call_operand.vmem [shape: bf16[512,128], index: 1, kind: input, shape index: {}]   ;;  %s760_s0 = inlined_call_operand.vmem [shape: bf16[32,512], index: 0, kind: input, shape index: {}]   ;;  %s761_s2 = inlined_call_operand.vmem [shape: f32[1,128], index: 2, kind: input, shape index: {}]   ;;  %s762_s3 = inlined_call_operand.vmem [shape: f32[32,128], index: 3, kind: output, shape index: {}]  }
   0x1   :  { %v560_v0 = vld [vmem:[%s759_s1 + $0x40] sm:$0xff]   ;;  %v564_v4 = vld [vmem:[%s759_s1 + $0x48] sm:$0xff]   ;;  %v568_v8 = vld [vmem:[%s759_s1 + $0x50] sm:$0xff]  }
   0x2   :  { %v561_v1 = vld [vmem:[%s759_s1 + $0xc0] sm:$0xff]   ;;  %504 = vmatprep.subr.bf16.mxu0 %v560_v0  ;;  %v565_v5 = vld [vmem:[%s759_s1 + $0xc8] sm:$0xff]   ;;  %v569_v9 = vld [vmem:[%s759_s1 + $0xd0] sm:$0xff]  }
   0x3   :  { %v562_v2 = vld [vmem:[%s759_s1] sm:$0xff]   ;;  %532 = vmatprep.subr.bf16.mxu1 %v561_v1  ;;  %v566_v6 = vld [vmem:[%s759_s1 + $0x8] sm:$0xff]   ;;  %v570_v10 = vld [vmem:[%s759_s1 + $0x10] sm:$0xff]  }
   0x4   :  { %v563_v3 = vld [vmem:[%s759_s1 + $0x80] sm:$0xff]   ;;  %505 = vmatpush3.bf16.msra.mxu0 %v562_v2  ;;  %v567_v7 = vld [vmem:[%s759_s1 + $0x88] sm:$0xff]   ;;  %v571_v11 = vld [vmem:[%s759_s1 + $0x90] sm:$0xff]  }
   0x5   :  { %533 = vmatpush3.bf16.msra.mxu1 %v563_v3  ;;  %506 = vmatprep.subr.bf16.mxu0 %v564_v4  ;;  %v572_v12 = vld [vmem:[%s759_s1 + $0x58] sm:$0xff]   ;;  %v576_v16 = vld [vmem:[%s759_s1 + $0x60] sm:$0xff]   ;;  %v580_v20 = vld [vmem:[%s759_s1 + $0x68] sm:$0xff]  }
   0x6   :  { %534 = vmatprep.subr.bf16.mxu1 %v565_v5  ;;  %v573_v13 = vld [vmem:[%s759_s1 + $0xd8] sm:$0xff]   ;;  %v577_v17 = vld [vmem:[%s759_s1 + $0xe0] sm:$0xff]   ;;  %v581_v21 = vld [vmem:[%s759_s1 + $0xe8] sm:$0xff]  }
   0x7   :  { %v574_v14 = vld [vmem:[%s759_s1 + $0x18] sm:$0xff]   ;;  %v578_v18 = vld [vmem:[%s759_s1 + $0x20] sm:$0xff]   ;;  %v582_v22 = vld [vmem:[%s759_s1 + $0x28] sm:$0xff]  }
   0x8   :  { %507 = vmatpush3.bf16.msra.mxu0 %v566_v6  ;;  %v575_v15 = vld [vmem:[%s759_s1 + $0x98] sm:$0xff]   ;;  %v579_v19 = vld [vmem:[%s759_s1 + $0xa0] sm:$0xff]   ;;  %v583_v23 = vld [vmem:[%s759_s1 + $0xa8] sm:$0xff]  }
   0x9   :  { %535 = vmatpush3.bf16.msra.mxu1 %v567_v7  ;;  %508 = vmatprep.subr.bf16.mxu0 %v568_v8  ;;  %v584_v24 = vld [vmem:[%s759_s1 + $0x70] sm:$0xff]   ;;  %v588_v28 = vld [vmem:[%s759_s1 + $0x78] sm:$0xff]   ;;  %v503_v49 = vld [vmem:[%s761_s2] ss:$0 sm:$0xff] }
   0xa   :  { %536 = vmatprep.subr.bf16.mxu1 %v569_v9  ;;  %v585_v25 = vld [vmem:[%s759_s1 + $0xf0] sm:$0xff]   ;;  %v589_v29 = vld [vmem:[%s759_s1 + $0xf8] sm:$0xff]  }
   0xb   :  { %v586_v26 = vld [vmem:[%s759_s1 + $0x30] sm:$0xff]   ;;  %v590_v30 = vld [vmem:[%s759_s1 + $0x38] sm:$0xff]  }
   0xc   :  { %509 = vmatpush3.bf16.msra.mxu0 %v570_v10  ;;  %v587_v27 = vld [vmem:[%s759_s1 + $0xb0] sm:$0xff]   ;;  %v591_v31 = vld [vmem:[%s759_s1 + $0xb8] sm:$0xff]  }
   0xd   :  { %537 = vmatpush3.bf16.msra.mxu1 %v571_v11  ;;  %510 = vmatprep.subr.bf16.mxu0 %v572_v12  ;;  %v592_v32 = vld [vmem:[%s760_s0] ss:$16 sps:$4 sm:$0xff]   ;;  %v594_v33 = vld [vmem:[%s760_s0 + $0x4] ss:$16 sps:$4 sm:$0xff]   ;;  %v595_v34 = vld [vmem:[%s760_s0 + $0x8] ss:$16 sps:$4 sm:$0xff]  }
   0xe   :  { %538 = vmatprep.subr.bf16.mxu1 %v573_v13  ;;  %v597_v35 = vld [vmem:[%s760_s0 + $0xc] ss:$16 sps:$4 sm:$0xff]   ;;  %363 = vmatprep.mubr.bf16.mxu0 %v594_v33  ;;  %v598_v36 = vld [vmem:[%s760_s0 + $0x24] ss:$16 sps:$4 sm:$0xff]   ;;  %v602_v38 = vld [vmem:[%s760_s0 + $0x20] ss:$16 sps:$4 sm:$0xff]  }
   0xf   :  { %412 = vmatprep.mubr.bf16.mxu1 %v597_v35  ;;  %v600_v37 = vld [vmem:[%s760_s0 + $0x2c] ss:$16 sps:$4 sm:$0xff]   ;;  %v603_v39 = vld [vmem:[%s760_s0 + $0x28] ss:$16 sps:$4 sm:$0xff]  }
  0x10   :  { %511 = vmatpush3.bf16.msra.mxu0 %v574_v14 }
  0x11   :  { %539 = vmatpush3.bf16.msra.mxu1 %v575_v15  ;;  %512 = vmatprep.subr.bf16.mxu0 %v576_v16 }
  0x12   :  { %540 = vmatprep.subr.bf16.mxu1 %v577_v17 }
  0x14   :  { %513 = vmatpush3.bf16.msra.mxu0 %v578_v18 }
  0x15   :  { %541 = vmatpush3.bf16.msra.mxu1 %v579_v19  ;;  %514 = vmatprep.subr.bf16.mxu0 %v580_v20 }
  0x16   :  { %542 = vmatprep.subr.bf16.mxu1 %v581_v21 }
  0x18   :  { %515 = vmatpush3.bf16.msra.mxu0 %v582_v22 }
  0x19   :  { %543 = vmatpush3.bf16.msra.mxu1 %v583_v23  ;;  %516 = vmatprep.subr.bf16.mxu0 %v584_v24 }
  0x1a   :  { %544 = vmatprep.subr.bf16.mxu1 %v585_v25 }
  0x1c   :  { %517 = vmatpush3.bf16.msra.mxu0 %v586_v26 }
  0x1d   :  { %545 = vmatpush3.bf16.msra.mxu1 %v587_v27  ;;  %518 = vmatprep.subr.bf16.mxu0 %v588_v28 }
  0x1e   :  { %546 = vmatprep.subr.bf16.mxu1 %v589_v29 }
  0x20   :  { %519 = vmatpush3.bf16.msra.mxu0 %v590_v30 }
  0x21   :  { %547 = vmatpush3.bf16.msra.mxu1 %v591_v31 }
  0x23   :  { %364 = vmatmul.mubr.bf16.vlgmr.msra.gmra.mrb[0].mxu0 %v592_v32 }
  0x24   :  { %413 = vmatmul.mubr.bf16.vlgmr.msra.gmra.mrb[0].mxu1 %v595_v34  ;;  %371 = vmatprep.mubr.bf16.mxu0 %v598_v36 }
  0x25   :  { %420 = vmatprep.mubr.bf16.mxu1 %v600_v37 }
  0x2b   :  { %372 = vmatmul.mubr.bf16.gmra.mrb[4].mxu0 %v602_v38 }
  0x2c   :  { %421 = vmatmul.mubr.bf16.gmra.mrb[4].mxu1 %v603_v39 }
  0xf6   :  { %v520_v40 = vpop.f32.mrb[0].mxu0 }
  0xf7   :  { %v548_v41 = vpop.f32.mrb[0].mxu1  ;;  %v521_v42 = vpop.f32.mrb[1].mxu0 }
  0xf8   :  { %v522_v43 = vadd.f32 %v521_v42, %v520_v40  ;;  %v549_v44 = vpop.f32.mrb[1].mxu1  ;;  %v523_v45 = vpop.f32.mrb[2].mxu0 }
  0xf9   :  { %v550_v46 = vadd.f32 %v549_v44, %v548_v41  ;;  %v551_v47 = vpop.f32.mrb[2].mxu1  ;;  %v524_v48 = vpop.f32.mrb[3].mxu0 }
  0xfa   :  { %v525_v50 = vadd.f32 %v524_v48, %v523_v45  ;;  %v552_v51 = vpop.f32.mrb[3].mxu1 }
  0xfb   :  { %v415_v52 = vadd.f32 %v550_v46, %v522_v43  ;;  %v553_v53 = vadd.f32 %v552_v51, %v551_v47 }
  0xfd   :  { %v451_v54 = vadd.f32 %v503_v49, %v415_v52  ;;  %v418_v55 = vadd.f32 %v553_v53, %v525_v50 }
  0xfe   :  { %v526_v56 = vpop.f32.mrb[4].mxu0 }
  0xff   :  { %455 = vst [vmem:[%s762_s3] sm:$0xff] %v451_v54  ;;  %v452_v57 = vadd.f32 %v503_v49, %v418_v55  ;;  %v554_v58 = vpop.f32.mrb[4].mxu1  ;;  %v527_v59 = vpop.f32.mrb[5].mxu0 }
 0x100   :  { %v528_v60 = vadd.f32 %v527_v59, %v526_v56  ;;  %v555_v61 = vpop.f32.mrb[5].mxu1  ;;  %v529_v62 = vpop.f32.mrb[6].mxu0 }
 0x101   :  { %456 = vst [vmem:[%s762_s3 + $0x8] sm:$0xff] %v452_v57  ;;  %v556_v63 = vadd.f32 %v555_v61, %v554_v58  ;;  %v557_v0 = vpop.f32.mrb[6].mxu1  ;;  %v530_v1 = vpop.f32.mrb[7].mxu0 }
 0x102   :  { %v531_v2 = vadd.f32 %v530_v1, %v529_v62  ;;  %v558_v3 = vpop.f32.mrb[7].mxu1 }
 0x103   :  { %v423_v4 = vadd.f32 %v556_v63, %v528_v60  ;;  %v559_v5 = vadd.f32 %v558_v3, %v557_v0 }
 0x105   :  { %v453_v6 = vadd.f32 %v503_v49, %v423_v4  ;;  %v426_v7 = vadd.f32 %v559_v5, %v531_v2 }
 0x107   :  { %457 = vst [vmem:[%s762_s3 + $0x10] sm:$0xff] %v453_v6  ;;  %v454_v8 = vadd.f32 %v503_v49, %v426_v7 }
 0x109   :  { %458 = vst [vmem:[%s762_s3 + $0x18] sm:$0xff] %v454_v8 }

// kernel: discriminator_forward.20
= control target key start
LH: loop header
LB: loop body
LE: loop exit
PB: predicated region body
PF: predicated region fallthrough
CT: control target
= control target key end

     0   :  { %s462_s12 = smov 0   ;;  %s464_s13 = smov 0   ;;  %s501_s0 = inlined_call_operand.vmem [shape: f32[2,16,64], index: 0, kind: input, shape index: {}]   ;;  %s502_s1 = inlined_call_operand.vmem [shape: f32[2,1,64], index: 1, kind: input, shape index: {}]   ;;  %s503_s2 = inlined_call_operand.vmem [shape: f32[2,1,64], index: 2, kind: input, shape index: {}]   ;;  %s504_s3 = inlined_call_operand.vmem [shape: f32[2,16,64], index: 3, kind: output, shape index: {}]  }
   0x1   :  { %s466_s14 = smov 0  }
   0x2 LB: > { %s25_s15 = sadd.s32 1, %s436_s13  ;;  %p383_p0 = scmp.ge.s32.totalorder %s440_s14, 1  ;;  %s440_s14 = sphi %s466_s14, %s13_s14   ;;  %s436_s13 = sphi %s464_s13, %s506_s13   ;;  %s432_s12 = sphi %s462_s12, %s505_s12  }
   0x3   : > { %p27_p1 = scmp.ge.s32.totalorder %s25_s15, 2  ;;  %p174_p2 = scmp.lt.s32.totalorder %s440_s14, 3 }
   0x5   : > { %s508_s15 = smov (%p27_p1, %s25_s15), 0  ;;  %p175_p3 = pnand %p383_p0, %p174_p2 }
   0x6   : > { %p213_p4 = scmp.lt.s32.totalorder (!%p175_p3), %s432_s12, 1  ;;  %v248_v5 = vlaneseq (!%p175_p3)  ;;  %vm271_vm0 = vcmask (!%p175_p3), 523264  }
   0x7   : > { %178 = sbr.rel (%p175_p3) target bundleno = 46 (0x2e), region = 32 }
   0x8   : > { %v249_v8 = vshrl.u32 (!%p175_p3), %v248_v5, 7 }
   0xa   : > { %v250_v10 = vsub.s32 (!%p175_p3), 0, %v249_v8 }
   0xe   : > { %s510_s12 = smov (!%p213_p4, %s432_s12), 1 }
   0xf   : > { %s224_s18 = scalar_lea.vmem %s502_s1, %s510_s12  ;;  %s227_s21 = scalar_lea.vmem %s503_s2, %s510_s12 }
  0x10   : > { %v240_v0 = vld [vmem:[%s224_s18] sm:$0x1]  ;;  %s390_s22 = sshll.u32 %s510_s12, 4 }
  0x11   : > { %v241_v1 = vmul.f32 0.0625, %v240_v0  ;;  %v242_v2 = vld [vmem:[%s227_s21] sm:$0x1]  ;;  %s220_s25 = scalar_lea.vmem %s501_s0, %s390_s22  ;;  %s236_s28 = scalar_lea.vmem %s504_s3, %s390_s22 }
  0x12   : > { %v243_v3 = vmul.f32 0.0625, %v242_v2  ;;  %v238_v12 = vld [vmem:[%s220_s25] sm:$0xff]  ;;  %v239_v13 = vld [vmem:[%s220_s25 + $0x8] sm:$0xff] }
  0x13   : > { %v244_v4 = vmul.f32 %v241_v1, %v241_v1  ;;  %v251_v11 = vrot.slane %v241_v1, %v250_v10 }
  0x15   : > { %v245_v6 = vsub.f32 %v243_v3, %v244_v4  ;;  %v253_v14 = vsub.f32 %v238_v12, %v251_v11  ;;  %v254_v15 = vsub.f32 %v239_v13, %v251_v11 }
  0x17   : > { %v246_v7 = vmax.f32 %v245_v6, 0.0 }
  0x19   : > { %v255_v9 = vadd.f32 1e-05, %v246_v7 }
  0x1b   : > { %416 = vrsqrt.f32 %v255_v9 }
  0x25   : > { %v417_v16 = vpop.eup %416 }
  0x26   : > { %v261_v17 = vrot.slane %v417_v16, %v250_v10 }
  0x28   : > { %v263_v18 = vmul.f32 %v261_v17, %v253_v14  ;;  %v264_v19 = vmul.f32 %v261_v17, %v254_v15 }
  0x2a   : > { %vm265_vm1 = vcmp.ge.f32.partialorder %v263_v18, 0.0  ;;  %v267_v20 = vmul.f32 0.2, %v263_v18  ;;  %vm266_vm2 = vcmp.ge.f32.partialorder %v264_v19, 0.0  ;;  %v268_v21 = vmul.f32 0.2, %v264_v19 }
  0x2c   : > { %v269_v22 = vsel %vm265_vm1, %v263_v18, %v267_v20  ;;  %v270_v23 = vsel %vm266_vm2, %v264_v19, %v268_v21 }
  0x2d   : > { %272 = vst.msk [vmem:[%s236_s28] sm:$0xff] %vm271_vm0, %v269_v22  ;;  %273 = vst.msk [vmem:[%s236_s28 + $0x8] sm:$0xff] %vm271_vm0, %v270_v23 }
  0x2e PF: > { %s13_s14 = sadd.s32 1, %s440_s14   ;;  %s505_s12 = smov %s436_s13 }
  0x2f   : > { %p10_p5 = scmp.ge.s32.totalorder %s13_s14, 4   ;;  %s506_s13 = smov %s508_s15 }
  0x31   :  { %12 = sbr.rel (!%p10_p5) target bundleno = 2 (0x2), region = 68 }

// kernel: discriminator_forward.19
= control target key start
LH: loop header
LB: loop body
LE: loop exit
PB: predicated region body
PF: predicated region fallthrough
CT: control target
= control target key end

     0   :  { %s375_s9 = smov 0   ;;  %s377_s10 = smov 0   ;;  %s420_s0 = inlined_call_operand.vmem [shape: f32[2,16,64], index: 0, kind: input, shape index: {}]   ;;  %s421_s1 = inlined_call_operand.vmem [shape: f32[2,1,64], index: 1, kind: output, shape index: {0}]   ;;  %s422_s2 = inlined_call_operand.vmem [shape: f32[2,1,64], index: 2, kind: output, shape index: {1}]  }
   0x1   :  { %s379_s11 = smov 0  }
   0x2 LB: > { %s25_s12 = sadd.s32 1, %s353_s10  ;;  %p304_p0 = scmp.ge.s32.totalorder %s357_s11, 1  ;;  %s357_s11 = sphi %s379_s11, %s13_s11   ;;  %s353_s10 = sphi %s377_s10, %s424_s10   ;;  %s349_s9 = sphi %s375_s9, %s423_s9  }
   0x3   : > { %p27_p1 = scmp.ge.s32.totalorder %s25_s12, 2  ;;  %p134_p2 = scmp.lt.s32.totalorder %s357_s11, 3 }
   0x5   : > { %s426_s12 = smov (%p27_p1, %s25_s12), 0  ;;  %p135_p3 = pnand %p304_p0, %p134_p2 }
   0x6   : > { %p162_p4 = scmp.lt.s32.totalorder (!%p135_p3), %s349_s9, 1  ;;  %vm181_vm0 = vcmask (!%p135_p3), 516096   ;;  %vm187_vm1 = vcmask (!%p135_p3), 523264   ;;  %v359_v0 = vmov (!%p135_p3), 0.0  }
   0x7   : > { %138 = sbr.rel (%p135_p3) target bundleno = 38 (0x26), region = 24 }
   0xe   : > { %s428_s9 = smov (!%p162_p4, %s349_s9), 1 }
   0xf   : > { %s309_s13 = sshll.u32 %s428_s9, 4  ;;  %s396_s16 = scalar_lea.vmem %s421_s1, %s428_s9 }
  0x10   : > { %s169_s19 = scalar_lea.vmem %s420_s0, %s309_s13  ;;  %182 = vst.msk [vmem:[%s396_s16] sm:$0x1] %vm181_vm0, %v359_v0  ;;  %s176_s22 = scalar_lea.vmem %s422_s2, %s428_s9 }
  0x11   : > { %v184_v1 = vld [vmem:[%s169_s19] sm:$0xff]  ;;  %v185_v2 = vld [vmem:[%s169_s19 + $0x8] sm:$0xff]  ;;  %183 = vst.msk [vmem:[%s176_s22] sm:$0x1] %vm181_vm0, %v359_v0 }
  0x12   : > { %v188_v3 = vsel %vm187_vm1, %v184_v1, 0.0  ;;  %v189_v4 = vsel %vm187_vm1, %v185_v2, 0.0  ;;  %v201_v5 = vmul.f32 %v184_v1, %v184_v1  ;;  %v202_v6 = vmul.f32 %v185_v2, %v185_v2 }
  0x13   : > { %v190_v7 = vadd.f32 %v189_v4, %v188_v3 }
  0x14   : > { %v203_v8 = vsel %vm187_vm1, %v201_v5, 0.0  ;;  %v204_v9 = vsel %vm187_vm1, %v202_v6, 0.0 }
  0x15   : > { %v191_v10 = vrot.slane %v190_v7, 4  ;;  %v205_v11 = vadd.f32 %v204_v9, %v203_v8 }
  0x17   : > { %v192_v12 = vadd.f32 %v191_v10, %v190_v7  ;;  %v206_v13 = vrot.slane %v205_v11, 4  ;;  %v186_v20 = vld [vmem:[%s396_s16] sm:$0x1] }
  0x18   : > { %v200_v23 = vld [vmem:[%s176_s22] sm:$0x1] }
  0x19   : > { %v193_v14 = vrot.slane %v192_v12, 2  ;;  %v207_v15 = vadd.f32 %v206_v13, %v205_v11 }
  0x1b   : > { %v194_v16 = vadd.f32 %v193_v14, %v192_v12  ;;  %v208_v17 = vrot.slane %v207_v15, 2 }
  0x1d   : > { %v195_v18 = vrot.slane %v194_v16, 1  ;;  %v209_v19 = vadd.f32 %v208_v17, %v207_v15 }
  0x1f   : > { %v196_v21 = vadd.f32 %v195_v18, %v194_v16  ;;  %v210_v22 = vrot.slane %v209_v19, 1 }
  0x21   : > { %v197_v24 = vadd.f32 %v196_v21, %v186_v20  ;;  %v211_v25 = vadd.f32 %v210_v22, %v209_v19 }
  0x23   : > { %199 = vst.msk [vmem:[%s396_s16] sm:$0x1] %vm181_vm0, %v197_v24  ;;  %v212_v26 = vadd.f32 %v211_v25, %v200_v23 }
  0x25   : > { %213 = vst.msk [vmem:[%s176_s22] sm:$0x1] %vm181_vm0, %v212_v26 }
  0x26 PF: > { %s13_s11 = sadd.s32 1, %s357_s11   ;;  %s423_s9 = smov %s353_s10 }
  0x27   : > { %p10_p5 = scmp.ge.s32.totalorder %s13_s11, 4   ;;  %s424_s10 = smov %s426_s12 }
  0x29   :  { %12 = sbr.rel (!%p10_p5) target bundleno = 2 (0x2), region = 70 }

// kernel: discriminator_forward.21
= control target key start
LH: loop header
LB: loop body
LE: loop exit
PB: predicated region body
PF: predicated region fallthrough
CT: control target
= control target key end

     0   :  { %s1250_s12 = smov 0   ;;  %s1252_s13 = smov 0   ;;  %s1391_s0 = inlined_call_operand.vmem [shape: bf16[56,1024], index: 0, kind: input, shape index: {}]   ;;  %s1392_s1 = inlined_call_operand.vmem [shape: bf16[1024,128], index: 1, kind: input, shape index: {}]   ;;  %s1393_s2 = inlined_call_operand.vmem [shape: f32[1,128], index: 2, kind: input, shape index: {}]   ;;  %s1394_s3 = inlined_call_operand.vmem [shape: f32[56,128], index: 3, kind: output, shape index: {}]  }
   0x1   :  { %s1254_s14 = smov 0   ;;  %s1256_s15 = smov 0  }
   0x2   :  { %s1258_s16 = smov 0  }
   0x3 LB: > { %s25_s17 = sadd.s32 1, %s1223_s15  ;;  %p48_p1 = scmp.ne.s32.totalorder %s1215_s13, %s1211_s12  ;;  %s1227_s16 = sphi %s1258_s16, %s13_s16   ;;  %s1223_s15 = sphi %s1256_s15, %s1398_s15   ;;  %s1219_s14 = sphi %s1254_s14, %s1397_s14   ;;  %s1215_s13 = sphi %s1252_s13, %s1396_s13   ;;  %s1211_s12 = sphi %s1250_s12, %s1395_s12  }
   0x4   : > { %p26_p0 = scmp.ge.s32.totalorder %s25_s17, 2  ;;  %p49_p2 = scmp.eq.s32.totalorder %s1227_s16, 0 }
   0x5   : > { %s41_s19 = sadd.s32 1, %s1215_s13  ;;  %p950_p5 = scmp.ge.s32.totalorder %s1227_s16, 2 }
   0x6   : > { %s1400_s17 = smov (%p26_p0, %s25_s17), 0  ;;  %p50_p3 = por %p49_p2, %p48_p1 }
   0x7   : > { %s37_s18 = ssub.s32 %s1223_s15, %s1400_s17  ;;  %162 = sbr.rel (%p950_p5) target bundleno = 25 (0x19), region = 20 }
   0x8   : > { %p39_p4 = scmp.eq.s32.totalorder %s37_s18, 0 }
   0xa   : > { %s1285_s20 = scalar_select %p39_p4, %s1215_s13, %s41_s19  }
   0xe   : > { %165 = sbr.rel (!%p50_p3) target bundleno = 25 (0x19), region = 24  ;;  %s167_s21 = sand.u32 (%p50_p3), 1, %s1215_s13  }
   0xf   : > { %s1011_s22 = sshll.u32 (%p50_p3), %s1223_s15, 4  ;;  %s1092_s23 = smul.u32 (%p50_p3), 112, %s167_s21 }
  0x10   : > { %s175_s26 = scalar_lea.vmem (%p50_p3), %s1391_s0, %s1011_s22 }
  0x11   : > { %v188_v0 = vld [vmem:[%s175_s26] sm:$0xff] (%p50_p3)  ;;  %v190_v1 = vld [vmem:[%s175_s26 + $0x8] sm:$0xff] (%p50_p3)  ;;  %s169_s27 = scalar_lea.vmem (%p50_p3), [#allocation3], %s1092_s23 }
  0x12   : > { %v192_v2 = vld [vmem:[%s175_s26 + $0x20] sm:$0xff] (%p50_p3)  ;;  %v194_v3 = vld [vmem:[%s175_s26 + $0x28] sm:$0xff] (%p50_p3)  ;;  %189 = vst [vmem:[%s169_s27] sm:$0xff] (%p50_p3), %v188_v0  ;;  %191 = vst [vmem:[%s169_s27 + $0x8] sm:$0xff] (%p50_p3), %v190_v1 }
  0x13   : > { %v196_v4 = vld [vmem:[%s175_s26 + $0x40] sm:$0xff] (%p50_p3)  ;;  %v198_v5 = vld [vmem:[%s175_s26 + $0x48] sm:$0xff] (%p50_p3)  ;;  %193 = vst [vmem:[%s169_s27 + $0x10] sm:$0xff] (%p50_p3), %v192_v2  ;;  %195 = vst [vmem:[%s169_s27 + $0x18] sm:$0xff] (%p50_p3), %v194_v3 }
  0x14   : > { %197 = vst [vmem:[%s169_s27 + $0x20] sm:$0xff] (%p50_p3), %v196_v4  ;;  %199 = vst [vmem:[%s169_s27 + $0x28] sm:$0xff] (%p50_p3), %v198_v5  ;;  %v200_v6 = vld [vmem:[%s175_s26 + $0x60] sm:$0xff] (%p50_p3)  ;;  %v202_v7 = vld [vmem:[%s175_s26 + $0x68] sm:$0xff] (%p50_p3) }
  0x15   : > { %v204_v8 = vld [vmem:[%s175_s26 + $0x80] sm:$0xff]  ;;  %201 = vst [vmem:[%s169_s27 + $0x30] sm:$0xff] %v200_v6  ;;  %203 = vst [vmem:[%s169_s27 + $0x38] sm:$0xff] %v202_v7  ;;  %v206_v9 = vld [vmem:[%s175_s26 + $0x88] sm:$0xff] }
  0x16   : > { %205 = vst [vmem:[%s169_s27 + $0x40] sm:$0xff] %v204_v8  ;;  %v208_v10 = vld [vmem:[%s175_s26 + $0xa0] sm:$0xff]  ;;  %v210_v11 = vld [vmem:[%s175_s26 + $0xa8] sm:$0xff]  ;;  %207 = vst [vmem:[%s169_s27 + $0x48] sm:$0xff] %v206_v9 }
  0x17   : > { %209 = vst [vmem:[%s169_s27 + $0x50] sm:$0xff] %v208_v10  ;;  %211 = vst [vmem:[%s169_s27 + $0x58] sm:$0xff] %v210_v11  ;;  %v212_v12 = vld [vmem:[%s175_s26 + $0xc0] sm:$0xff]  ;;  %v214_v13 = vld [vmem:[%s175_s26 + $0xc8] sm:$0xff] }
  0x18   : > { %213 = vst [vmem:[%s169_s27 + $0x60] sm:$0xff] %v212_v12  ;;  %215 = vst [vmem:[%s169_s27 + $0x68] sm:$0xff] %v214_v13 }
  0x19 PF: > { %p953_p6 = scmp.ge.s32.totalorder %s1227_s16, 1  ;;  %p232_p7 = scmp.lt.s32.totalorder %s1227_s16, 3 }
  0x1b   : > { %p233_p8 = pnand %p953_p6, %p232_p7 }
  0x1c   : > { %s239_s28 = sand.u32 (!%p233_p8), 1, %s1211_s12   ;;  %s954_s29 = sshll.u32 (!%p233_p8), %s1219_s14, 6 }
  0x1d   : > { %236 = sbr.rel (%p233_p8) target bundleno = 332 (0x14c), region = 51  ;;  %p279_p9 = scmp.lt.s32.totalorder (!%p233_p8), %s954_s29, 127 }
  0x1e   : > { %s1093_s30 = smul.u32 (!%p233_p8), 112, %s239_s28  ;;  %p956_p10 = scmp.ne.s32.totalorder (!%p233_p8), %s1219_s14, 0 }
  0x20   : > { %s1302_s8 = scalar_lea.vmem (!%p233_p8), [#allocation3], %s1093_s30 }
  0x24   : > { %s1402_s29 = smov (!%p279_p9, %s954_s29), 127  ;;  %303 = sbr.rel (%p956_p10) target bundleno = 43 (0x2b), region = 59 }
  0x25   : > { %s955_s4 = sshll.u32 %s1402_s29, 2  ;;  %v1229_v14 = vmov (!%p956_p10), 0.0  }
  0x26   : > { %s1300_s7 = scalar_lea.vmem %s1392_s1, %s955_s4  ;;  %304 = vst [vmem:[#allocation2] sm:$0xff] (!%p956_p10), %v1229_v14  ;;  %305 = vst [vmem:[#allocation2 + $0x8] sm:$0xff] (!%p956_p10), %v1229_v14 }
  0x27   : > { %306 = vst [vmem:[#allocation2 + $0x10] sm:$0xff] (!%p956_p10), %v1229_v14  ;;  %307 = vst [vmem:[#allocation2 + $0x18] sm:$0xff] (!%p956_p10), %v1229_v14 }
  0x28   : > { %308 = vst [vmem:[#allocation2 + $0x20] sm:$0xff] (!%p956_p10), %v1229_v14  ;;  %309 = vst [vmem:[#allocation2 + $0x28] sm:$0xff] (!%p956_p10), %v1229_v14 }
  0x29   : > { %310 = vst [vmem:[#allocation2 + $0x30] sm:$0xff] (!%p956_p10), %v1229_v14 }
  0x2b PF: > { %v1135_v15 = vld [vmem:[%s1300_s7 + $0x40] sm:$0xff]   ;;  %v1139_v19 = vld [vmem:[%s1300_s7 + $0x48] sm:$0xff]   ;;  %v1143_v23 = vld [vmem:[%s1300_s7 + $0x50] sm:$0xff]   ;;  %p1005_p11 = scmp.ne.s32.totalorder %s1219_s14, 1 }
  0x2c   : > { %v1136_v16 = vld [vmem:[%s1300_s7 + $0xc0] sm:$0xff]   ;;  %1012 = vmatprep.subr.bf16.mxu0 %v1135_v15  ;;  %v1140_v20 = vld [vmem:[%s1300_s7 + $0xc8] sm:$0xff]   ;;  %v1144_v24 = vld [vmem:[%s1300_s7 + $0xd0] sm:$0xff]  }
  0x2d   : > { %v1137_v17 = vld [vmem:[%s1300_s7] sm:$0xff]   ;;  %1052 = vmatprep.subr.bf16.mxu1 %v1136_v16  ;;  %v1141_v21 = vld [vmem:[%s1300_s7 + $0x8] sm:$0xff]   ;;  %v1145_v25 = vld [vmem:[%s1300_s7 + $0x10] sm:$0xff]  }
  0x2e   : > { %v1138_v18 = vld [vmem:[%s1300_s7 + $0x80] sm:$0xff]   ;;  %1013 = vmatpush3.bf16.msra.mxu0 %v1137_v17  ;;  %v1142_v22 = vld [vmem:[%s1300_s7 + $0x88] sm:$0xff]   ;;  %v1146_v26 = vld [vmem:[%s1300_s7 + $0x90] sm:$0xff]  }
  0x2f   : > { %1053 = vmatpush3.bf16.msra.mxu1 %v1138_v18  ;;  %1014 = vmatprep.subr.bf16.mxu0 %v1139_v19  ;;  %v1147_v27 = vld [vmem:[%s1300_s7 + $0x58] sm:$0xff]   ;;  %v1151_v31 = vld [vmem:[%s1300_s7 + $0x60] sm:$0xff]   ;;  %v1155_v35 = vld [vmem:[%s1300_s7 + $0x68] sm:$0xff]  }
  0x30   : > { %1054 = vmatprep.subr.bf16.mxu1 %v1140_v20  ;;  %v1148_v28 = vld [vmem:[%s1300_s7 + $0xd8] sm:$0xff]   ;;  %v1152_v32 = vld [vmem:[%s1300_s7 + $0xe0] sm:$0xff]   ;;  %v1156_v36 = vld [vmem:[%s1300_s7 + $0xe8] sm:$0xff]  }
  0x31   : > { %v1149_v29 = vld [vmem:[%s1300_s7 + $0x18] sm:$0xff]   ;;  %v1153_v33 = vld [vmem:[%s1300_s7 + $0x20] sm:$0xff]   ;;  %v1157_v37 = vld [vmem:[%s1300_s7 + $0x28] sm:$0xff]  }
  0x32   : > { %1015 = vmatpush3.bf16.msra.mxu0 %v1141_v21  ;;  %v1150_v30 = vld [vmem:[%s1300_s7 + $0x98] sm:$0xff]   ;;  %v1154_v34 = vld [vmem:[%s1300_s7 + $0xa0] sm:$0xff]   ;;  %v1158_v38 = vld [vmem:[%s1300_s7 + $0xa8] sm:$0xff]  }
  0x33   : > { %1055 = vmatpush3.bf16.msra.mxu1 %v1142_v22  ;;  %1016 = vmatprep.subr.bf16.mxu0 %v1143_v23  ;;  %v1159_v39 = vld [vmem:[%s1300_s7 + $0x70] sm:$0xff]   ;;  %v1163_v43 = vld [vmem:[%s1300_s7 + $0x78] sm:$0xff]   ;;  %v311_v10 = vld [vmem:[#allocation2] sm:$0xff] }
  0x34   : > { %1056 = vmatprep.subr.bf16.mxu1 %v1144_v24  ;;  %v1160_v40 = vld [vmem:[%s1300_s7 + $0xf0] sm:$0xff]   ;;  %v1164_v44 = vld [vmem:[%s1300_s7 + $0xf8] sm:$0xff]   ;;  %v312_v15 = vld [vmem:[#allocation2 + $0x8] sm:$0xff] }
  0x35   : > { %v1161_v41 = vld [vmem:[%s1300_s7 + $0x30] sm:$0xff]   ;;  %v1165_v45 = vld [vmem:[%s1300_s7 + $0x38] sm:$0xff]  }
  0x36   : > { %1017 = vmatpush3.bf16.msra.mxu0 %v1145_v25  ;;  %v1162_v42 = vld [vmem:[%s1300_s7 + $0xb0] sm:$0xff]   ;;  %v1166_v46 = vld [vmem:[%s1300_s7 + $0xb8] sm:$0xff]  }
  0x37   : > { %1057 = vmatpush3.bf16.msra.mxu1 %v1146_v26  ;;  %1018 = vmatprep.subr.bf16.mxu0 %v1147_v27  ;;  %v1167_v47 = vld [vmem:[%s1302_s8] ss:$16 sps:$4 sm:$0xff]   ;;  %v1169_v48 = vld [vmem:[%s1302_s8 + $0x4] ss:$16 sps:$4 sm:$0xff]   ;;  %v1170_v49 = vld [vmem:[%s1302_s8 + $0x8] ss:$16 sps:$4 sm:$0xff]  }
  0x38   : > { %1058 = vmatprep.subr.bf16.mxu1 %v1148_v28  ;;  %v1172_v50 = vld [vmem:[%s1302_s8 + $0xc] ss:$16 sps:$4 sm:$0xff]   ;;  %694 = vmatprep.mubr.bf16.mxu0 %v1169_v48  ;;  %v1173_v51 = vld [vmem:[%s1302_s8 + $0x24] ss:$16 sps:$4 sm:$0xff]   ;;  %v1177_v53 = vld [vmem:[%s1302_s8 + $0x20] ss:$16 sps:$4 sm:$0xff]  }
  0x39   : > { %758 = vmatprep.mubr.bf16.mxu1 %v1172_v50  ;;  %v1175_v52 = vld [vmem:[%s1302_s8 + $0x2c] ss:$16 sps:$4 sm:$0xff]   ;;  %v1178_v54 = vld [vmem:[%s1302_s8 + $0x28] ss:$16 sps:$4 sm:$0xff]   ;;  %v1179_v55 = vld [vmem:[%s1302_s8 + $0x44] ss:$16 sps:$4 sm:$0xff]  }
  0x3a   : > { %1019 = vmatpush3.bf16.msra.mxu0 %v1149_v29  ;;  %v1181_v56 = vld [vmem:[%s1302_s8 + $0x4c] ss:$16 sps:$4 sm:$0xff]   ;;  %v330_v57 = vld [vmem:[%s1302_s8 + $0x60] sm:$0xff]  ;;  %v1184_v60 = vld [vmem:[%s1302_s8 + $0x48] ss:$16 sps:$4 sm:$0xff]  }
  0x3b   : > { %1059 = vmatpush3.bf16.msra.mxu1 %v1150_v30  ;;  %1020 = vmatprep.subr.bf16.mxu0 %v1151_v31  ;;  %v331_v58 = vld [vmem:[%s1302_s8 + $0x68] sm:$0xff]  ;;  %v1183_v59 = vld [vmem:[%s1302_s8 + $0x40] ss:$16 sps:$4 sm:$0xff]   ;;  %v970_v61 = vcombine.high %v330_v57, %v330_v57  ;;  %v969_v63 = vcombine.low %v330_v57, %v330_v57 }
  0x3c   : > { %1060 = vmatprep.subr.bf16.mxu1 %v1152_v32  ;;  %v972_v62 = vcombine.high %v331_v58, %v331_v58  ;;  %v971_v0 = vcombine.low %v331_v58, %v331_v58  ;;  %v313_v28 = vld [vmem:[#allocation2 + $0x10] sm:$0xff] }
  0x3e   : > { %1021 = vmatpush3.bf16.msra.mxu0 %v1153_v33  ;;  %v314_v33 = vld [vmem:[#allocation2 + $0x18] sm:$0xff] }
  0x3f   : > { %1061 = vmatpush3.bf16.msra.mxu1 %v1154_v34  ;;  %1022 = vmatprep.subr.bf16.mxu0 %v1155_v35 }
  0x40   : > { %1062 = vmatprep.subr.bf16.mxu1 %v1156_v36 }
  0x42   : > { %1023 = vmatpush3.bf16.msra.mxu0 %v1157_v37 }
  0x43   : > { %1063 = vmatpush3.bf16.msra.mxu1 %v1158_v38  ;;  %1024 = vmatprep.subr.bf16.mxu0 %v1159_v39 }
  0x44   : > { %1064 = vmatprep.subr.bf16.mxu1 %v1160_v40 }
  0x46   : > { %1025 = vmatpush3.bf16.msra.mxu0 %v1161_v41 }
  0x47   : > { %1065 = vmatpush3.bf16.msra.mxu1 %v1162_v42  ;;  %1026 = vmatprep.subr.bf16.mxu0 %v1163_v43 }
  0x48   : > { %1066 = vmatprep.subr.bf16.mxu1 %v1164_v44 }
  0x4a   : > { %1027 = vmatpush3.bf16.msra.mxu0 %v1165_v45 }
  0x4b   : > { %1067 = vmatpush3.bf16.msra.mxu1 %v1166_v46  ;;  %v315_v46 = vld [vmem:[#allocation2 + $0x20] sm:$0xff] }
  0x4d   : > { %695 = vmatmul.mubr.bf16.vlgmr.msra.gmra.mrb[0].mxu0 %v1167_v47 }
  0x4e   : > { %759 = vmatmul.mubr.bf16.vlgmr.msra.gmra.mrb[0].mxu1 %v1170_v49  ;;  %702 = vmatprep.mubr.bf16.mxu0 %v1173_v51  ;;  %v316_v51 = vld [vmem:[#allocation2 + $0x28] sm:$0xff] }
  0x4f   : > { %766 = vmatprep.mubr.bf16.mxu1 %v1175_v52 }
  0x55   : > { %703 = vmatmul.mubr.bf16.gmra.mrb[4].mxu0 %v1177_v53 }
  0x56   : > { %767 = vmatmul.mubr.bf16.gmra.mrb[4].mxu1 %v1178_v54  ;;  %710 = vmatprep.mubr.bf16.mxu0 %v1179_v55 }
  0x57   : > { %774 = vmatprep.mubr.bf16.mxu1 %v1181_v56 }
  0x5d   : > { %711 = vmatmul.mubr.bf16.gmra.mrb[8].mxu0 %v1183_v59 }
  0x5e   : > { %775 = vmatmul.mubr.bf16.gmra.mrb[8].mxu1 %v1184_v60  ;;  %718 = vmatprep.mubr.bf16.mxu0 %v970_v61 }
  0x5f   : > { %782 = vmatprep.mubr.bf16.mxu1 %v972_v62 }
  0x65   : > { %719 = vmatmul.mubr.bf16.gmra.mrb[12].mxu0 %v969_v63 }
  0x66   : > { %783 = vmatmul.mubr.bf16.gmra.mrb[12].mxu1 %v971_v0  ;;  %v317_v0 = vld [vmem:[#allocation2 + $0x30] sm:$0xff] }
 0x120   : > { %v1028_v1 = vpop.f32.mrb[0].mxu0 }
 0x121   : > { %v1068_v2 = vpop.f32.mrb[0].mxu1  ;;  %v1029_v3 = vpop.f32.mrb[1].mxu0 }
 0x122   : > { %v1030_v4 = vadd.f32 %v1029_v3, %v1028_v1  ;;  %v1069_v5 = vpop.f32.mrb[1].mxu1  ;;  %v1031_v6 = vpop.f32.mrb[2].mxu0 }
 0x123   : > { %v1070_v7 = vadd.f32 %v1069_v5, %v1068_v2  ;;  %v1071_v8 = vpop.f32.mrb[2].mxu1  ;;  %v1032_v9 = vpop.f32.mrb[3].mxu0  ;;  %v1006_v5 = vld [vmem:[%s1393_s2] ss:$0 sm:$0xff] (!%p1005_p11) }
 0x124   : > { %v1033_v11 = vadd.f32 %v1032_v9, %v1031_v6  ;;  %v1072_v12 = vpop.f32.mrb[3].mxu1 }
 0x125   : > { %v761_v13 = vadd.f32 %v1070_v7, %v1030_v4  ;;  %v1073_v14 = vadd.f32 %v1072_v12, %v1071_v8 }
 0x127   : > { %v790_v16 = vadd.f32 %v761_v13, %v311_v10  ;;  %v764_v17 = vadd.f32 %v1073_v14, %v1033_v11 }
 0x128   : > { %v1034_v18 = vpop.f32.mrb[4].mxu0 }
 0x129   : > { %797 = vst [vmem:[#allocation2] sm:$0xff] %v790_v16  ;;  %v791_v19 = vadd.f32 %v764_v17, %v312_v15  ;;  %v1074_v20 = vpop.f32.mrb[4].mxu1  ;;  %v1035_v21 = vpop.f32.mrb[5].mxu0 }
 0x12a   : > { %v1036_v22 = vadd.f32 %v1035_v21, %v1034_v18  ;;  %v1075_v23 = vpop.f32.mrb[5].mxu1  ;;  %v1037_v24 = vpop.f32.mrb[6].mxu0 }
 0x12b   : > { %798 = vst [vmem:[#allocation2 + $0x8] sm:$0xff] %v791_v19  ;;  %v1076_v25 = vadd.f32 %v1075_v23, %v1074_v20  ;;  %v1077_v26 = vpop.f32.mrb[6].mxu1  ;;  %v1038_v27 = vpop.f32.mrb[7].mxu0 }
 0x12c   : > { %v1039_v29 = vadd.f32 %v1038_v27, %v1037_v24  ;;  %v1078_v30 = vpop.f32.mrb[7].mxu1 }
 0x12d   : > { %v769_v31 = vadd.f32 %v1076_v25, %v1036_v22  ;;  %v1079_v32 = vadd.f32 %v1078_v30, %v1077_v26 }
 0x12f   : > { %v792_v34 = vadd.f32 %v769_v31, %v313_v28  ;;  %v772_v35 = vadd.f32 %v1079_v32, %v1039_v29 }
 0x130   : > { %v1040_v36 = vpop.f32.mrb[8].mxu0  ;;  %v808_v4 = vld [vmem:[#allocation2] sm:$0xff] (!%p1005_p11) }
 0x131   : > { %799 = vst [vmem:[#allocation2 + $0x10] sm:$0xff] %v792_v34  ;;  %v793_v37 = vadd.f32 %v772_v35, %v314_v33  ;;  %v1080_v38 = vpop.f32.mrb[8].mxu1  ;;  %v1041_v39 = vpop.f32.mrb[9].mxu0  ;;  %v822_v7 = vadd.f32 (!%p1005_p11), %v1006_v5, %v808_v4 }
 0x132   : > { %v1042_v40 = vadd.f32 %v1041_v39, %v1040_v36  ;;  %v1081_v41 = vpop.f32.mrb[9].mxu1  ;;  %v1043_v42 = vpop.f32.mrb[10].mxu0  ;;  %v809_v6 = vld [vmem:[#allocation2 + $0x8] sm:$0xff] (!%p1005_p11) }
 0x133   : > { %800 = vst [vmem:[#allocation2 + $0x18] sm:$0xff] %v793_v37  ;;  %v1082_v43 = vadd.f32 %v1081_v41, %v1080_v38  ;;  %v1083_v44 = vpop.f32.mrb[10].mxu1  ;;  %v1044_v45 = vpop.f32.mrb[11].mxu0  ;;  %v823_v8 = vadd.f32 (!%p1005_p11), %v1006_v5, %v809_v6  ;;  %829 = vst [vmem:[%s1394_s3] sm:$0xff] (!%p1005_p11), %v822_v7 }
 0x134   : > { %v1045_v47 = vadd.f32 %v1044_v45, %v1043_v42  ;;  %v1084_v48 = vpop.f32.mrb[11].mxu1 }
 0x135   : > { %v777_v49 = vadd.f32 %v1082_v43, %v1042_v40  ;;  %v1085_v50 = vadd.f32 %v1084_v48, %v1083_v44  ;;  %830 = vst [vmem:[%s1394_s3 + $0x8] sm:$0xff] (!%p1005_p11), %v823_v8 }
 0x137   : > { %v794_v52 = vadd.f32 %v777_v49, %v315_v46  ;;  %v780_v53 = vadd.f32 %v1085_v50, %v1045_v47 }
 0x138   : > { %v1046_v54 = vpop.f32.mrb[12].mxu0  ;;  %v810_v9 = vld [vmem:[#allocation2 + $0x10] sm:$0xff] (!%p1005_p11) }
 0x139   : > { %801 = vst [vmem:[#allocation2 + $0x20] sm:$0xff] %v794_v52  ;;  %v795_v55 = vadd.f32 %v780_v53, %v316_v51  ;;  %v1086_v56 = vpop.f32.mrb[12].mxu1  ;;  %v1047_v57 = vpop.f32.mrb[13].mxu0  ;;  %v824_v12 = vadd.f32 (!%p1005_p11), %v1006_v5, %v810_v9 }
 0x13a   : > { %v1048_v58 = vadd.f32 %v1047_v57, %v1046_v54  ;;  %v1087_v59 = vpop.f32.mrb[13].mxu1  ;;  %v1049_v60 = vpop.f32.mrb[14].mxu0  ;;  %v811_v10 = vld [vmem:[#allocation2 + $0x18] sm:$0xff] (!%p1005_p11) }
 0x13b   : > { %802 = vst [vmem:[#allocation2 + $0x28] sm:$0xff] %v795_v55  ;;  %v1088_v61 = vadd.f32 %v1087_v59, %v1086_v56  ;;  %v1089_v62 = vpop.f32.mrb[14].mxu1  ;;  %v1050_v63 = vpop.f32.mrb[15].mxu0  ;;  %807 = sbr.rel (%p1005_p11) target bundleno = 332 (0x14c), region = 63  ;;  %v825_v13 = vadd.f32 (!%p1005_p11), %v1006_v5, %v811_v10  ;;  %831 = vst [vmem:[%s1394_s3 + $0x10] sm:$0xff] (!%p1005_p11), %v824_v12 }
 0x13c   : > { %v1090_v1 = vpop.f32.mrb[15].mxu1 }
 0x13d   : > { %v785_v2 = vadd.f32 %v1088_v61, %v1048_v58  ;;  %832 = vst [vmem:[%s1394_s3 + $0x18] sm:$0xff] (!%p1005_p11), %v825_v13 }
 0x13f   : > { %v796_v3 = vadd.f32 %v785_v2, %v317_v0 }
 0x140   : > { %v812_v11 = vld [vmem:[#allocation2 + $0x20] sm:$0xff] (!%p1005_p11) }
 0x141   : > { %803 = vst [vmem:[#allocation2 + $0x30] sm:$0xff] %v796_v3  ;;  %v826_v14 = vadd.f32 (!%p1005_p11), %v1006_v5, %v812_v11 }
 0x142   : > { %v813_v15 = vld [vmem:[#allocation2 + $0x28] sm:$0xff] }
 0x143   : > { %v827_v17 = vadd.f32 %v1006_v5, %v813_v15  ;;  %833 = vst [vmem:[%s1394_s3 + $0x20] sm:$0xff] %v826_v14 }
 0x145   : > { %834 = vst [vmem:[%s1394_s3 + $0x28] sm:$0xff] %v827_v17 }
 0x148   : > { %v814_v16 = vld [vmem:[#allocation2 + $0x30] sm:$0xff] }
 0x149   : > { %v828_v18 = vadd.f32 %v1006_v5, %v814_v16 }
 0x14b   : > { %835 = vst [vmem:[%s1394_s3 + $0x30] sm:$0xff] %v828_v18 }
 0x14c PF: > { %s13_s16 = sadd.s32 1, %s1227_s16   ;;  %s1395_s12 = smov %s1215_s13 }
 0x14d   : > { %p10_p12 = scmp.ge.s32.totalorder %s13_s16, 4   ;;  %s1396_s13 = smov %s1285_s20 }
 0x14e   : > { %s1397_s14 = smov %s1223_s15  ;;  %s1398_s15 = smov %s1400_s17 }
 0x14f   :  { %12 = sbr.rel (!%p10_p12) target bundleno = 3 (0x3), region = 104 }

</bundles_post_ra>
